<compile_context>
chip_gen: v6e
topology: v6e:2x2x1
jax: 0.10.0
libtpu: 0.0.40
codegen_flags: <defaults>
</compile_context>

<pallas_src>
import jax
import jax.numpy as jnp
from jax.experimental import pallas as pl
from jax.experimental.pallas import tpu as pltpu

LANES = 128   # lane width: every weight block is (128, 128); activations are (TB, 128)
KPAD = 128    # padded reduction dim per weight block


def _round_up(x, m):
    return (x + m - 1) // m * m


# ---------------------------------------------------------------------------
# Parameter construction
# ---------------------------------------------------------------------------
def init_layers(key, input_dim, hidden_dim, z_dim, action_dim, hidden_dim_head):
    """Deterministic synthetic parameters.  Each nn.Linear(in, out) is stored
    pre-transposed: weight [in, out], bias [1, out], so the kernel computes y = x @ W + b.
    (fc4 / log_var is dead code in forward() and is not materialized.)"""
    hdh2 = hidden_dim_head // 2
    shapes = [
        ("fc1", input_dim, hidden_dim),
        ("fc2", hidden_dim, hidden_dim),
        ("fc3", hidden_dim, z_dim),
        ("fc1_contr", z_dim + action_dim, hdh2),
        ("fc2_contr", hdh2, hidden_dim_head),
        ("fc3_contr", hidden_dim_head, hdh2),
        ("fc4_contr", hdh2, z_dim),
        ("fc5", z_dim, hidden_dim),
        ("fc6", hidden_dim, hidden_dim),
        ("fc7", hidden_dim, input_dim),
    ]
    keys = jax.random.split(key, 2 * len(shapes))
    layers = {}
    for i, (name, fan_in, fan_out) in enumerate(shapes):
        scale = 1.0 / jnp.sqrt(jnp.float32(fan_in))
        w = jax.random.normal(keys[2 * i], (fan_in, fan_out), jnp.float32) * scale
        b = jax.random.normal(keys[2 * i + 1], (1, fan_out), jnp.float32) * 0.1
        layers[name] = (w, b)
    return layers


# ---------------------------------------------------------------------------
# Packing: one bf16 weight slab of (128,128) tiles + one f32 bias slab
# ---------------------------------------------------------------------------
W_ORDER = ["fc1", "fc2", "fc3", "fc1_contr_z", "fc1_contr_a",
           "fc2_contr", "fc3_contr", "fc4_contr", "fc5", "fc6", "fc7"]
B_ORDER = ["fc1", "fc2", "fc3", "fc1_contr", "fc2_contr", "fc3_contr",
           "fc4_contr", "fc5", "fc6", "fc7"]


def pack_params(layers, input_dim, z_dim, action_dim):
    """Every weight becomes a zero-padded (128, 128) block; biases become 128-lane rows.

    - fc1's rows sit at 0..input_dim-1 of the fused [x|action] input; the action lanes hit
      zero rows and contribute nothing.
    - fc1_contr is split: a z-part (rows 0..z_dim-1) and an action-part whose rows sit at
      the action lane offset (input_dim..) of the fused input, so
      cat([z, action]) @ W1c == z @ Wz + xa_fused @ Wa exactly.
    All padding is zero, so padded lanes stay exactly zero through every layer and the
    final (TB, input_dim) store is exact.
    """
    fused_in = input_dim + action_dim
    assert fused_in <= LANES, "fused [x|action] must fit in 128 lanes"

    def blk(w, row_off=0):
        fin, fout = w.shape
        assert row_off + fin <= KPAD and fout <= LANES, \
            "layer too large for single 128x128 block packing"
        b = jnp.zeros((KPAD, LANES), jnp.float32)
        return b.at[row_off:row_off + fin, :fout].set(w)

    w1c, _ = layers["fc1_contr"]
    blocks = {
        "fc1": blk(layers["fc1"][0]),                       # reads fused input
        "fc2": blk(layers["fc2"][0]),
        "fc3": blk(layers["fc3"][0]),
        "fc1_contr_z": blk(w1c[:z_dim, :]),
        "fc1_contr_a": blk(w1c[z_dim:, :], row_off=input_dim),  # aligned to action lanes
        "fc2_contr": blk(layers["fc2_contr"][0]),
        "fc3_contr": blk(layers["fc3_contr"][0]),
        "fc4_contr": blk(layers["fc4_contr"][0]),
        "fc5": blk(layers["fc5"][0]),
        "fc6": blk(layers["fc6"][0]),
        "fc7": blk(layers["fc7"][0]),
    }
    w_slab = jnp.concatenate([blocks[n] for n in W_ORDER], axis=0).astype(jnp.bfloat16)

    b_slab = jnp.zeros((_round_up(len(B_ORDER), 8), LANES), jnp.float32)
    for i, name in enumerate(B_ORDER):
        b = layers[name][1]
        b_slab = b_slab.at[i, :b.shape[1]].set(b[0])

    flops_per_row = 2 * sum(layers[n][0].shape[0] * layers[n][0].shape[1] for n in layers)
    meta = dict(fused_in=fused_in, flops_per_row=int(flops_per_row))
    return w_slab, b_slab, meta


# ---------------------------------------------------------------------------
# Kernel (weight-block / bias-row indices follow W_ORDER / B_ORDER)
# ---------------------------------------------------------------------------
_FC1, _FC2, _FC3, _FC1C_Z, _FC1C_A, _FC2C, _FC3C, _FC4C, _FC5, _FC6, _FC7 = range(11)
_B1, _B2, _B3, _B1C, _B2C, _B3C, _B4C, _B5, _B6, _B7 = range(10)


def world_model_kernel(xa_ref, w_ref, b_ref, out_ref):
    f32, bf16 = jnp.float32, jnp.bfloat16

    def wblk(i):                                   # tile-aligned (128,128) bf16 block
        return w_ref[i * KPAD:(i + 1) * KPAD, :]

    def layer(h_bf, widx, bidx, relu=True):        # full-tile matmul + 128-lane bias row
        y = jnp.dot(h_bf, wblk(widx), preferred_element_type=f32) + b_ref[bidx:bidx + 1, :]
        return jnp.maximum(y, 0.0) if relu else y

    xa = xa_ref[...].astype(bf16)                  # fused [x | action | 0...], 128 lanes

    # ---- encode (fc4 / log_var dead code; reparameterize returns mu) ----
    h = layer(xa, _FC1, _B1).astype(bf16)
    h = layer(h, _FC2, _B2).astype(bf16)
    mu = layer(h, _FC3, _B3, relu=False).astype(bf16)

    # ---- transitionZ: cat([mu, action]) @ W1c == mu @ Wz + xa @ Wa ----
    t = (jnp.dot(mu, wblk(_FC1C_Z), preferred_element_type=f32)
         + jnp.dot(xa, wblk(_FC1C_A), preferred_element_type=f32)
         + b_ref[_B1C:_B1C + 1, :])
    t = jnp.maximum(t, 0.0).astype(bf16)
    t = layer(t, _FC2C, _B2C).astype(bf16)
    t = layer(t, _FC3C, _B3C).astype(bf16)
    z = layer(t, _FC4C, _B4C, relu=False).astype(bf16)

    # ---- decode ----
    h = layer(z, _FC5, _B5).astype(bf16)
    h = layer(h, _FC6, _B6).astype(bf16)
    y = layer(h, _FC7, _B7, relu=False)            # f32 (TB, 128)

    # store only the real output columns (8x fewer HBM bytes than a padded f32 tile)
    out_ref[...] = y[:, :out_ref.shape[1]].astype(out_ref.dtype)


# ---------------------------------------------------------------------------
# Wrapper
# ---------------------------------------------------------------------------
def world_model_forward(x, action, packed, *, block_b=None):
    w_slab, b_slab, meta = packed
    B, input_dim = x.shape
    action_dim = action.shape[1]
    assert meta["fused_in"] == input_dim + action_dim

    if block_b is None:
        # Amortize per-grid-step overhead with coarse tiles, but keep >=2 steps
        # when possible so v7x's 2 TensorCores both get work.
        block_b = min(512, max(8, _round_up((B + 1) // 2, 8)))
    n_blocks = pl.cdiv(B, block_b)
    Bp = n_blocks * block_b

    # Fuse x|action into one lane-dense (Bp, 128) input (zero-padded rows and lanes).
    xa = jnp.concatenate([x, action], axis=1)
    xa = jnp.pad(xa, ((0, Bp - B), (0, LANES - xa.shape[1])))

    cost = pl.CostEstimate(
        flops=meta["flops_per_row"] * Bp,
        transcendentals=0,
        bytes_accessed=int(xa.size * 4 + Bp * input_dim * 4
                           + w_slab.size * 2 + b_slab.size * 4),
    )

    out = pl.pallas_call(
        world_model_kernel,
        out_shape=jax.ShapeDtypeStruct((Bp, input_dim), x.dtype),
        grid=(n_blocks,),
        in_specs=[
            pl.BlockSpec((block_b, LANES), lambda i: (i, 0)),   # fused activation tile
            pl.BlockSpec(w_slab.shape, lambda i: (0, 0)),       # weight slab: VMEM-resident
            pl.BlockSpec(b_slab.shape, lambda i: (0, 0)),       # bias slab: VMEM-resident
        ],
        out_specs=pl.BlockSpec((block_b, input_dim), lambda i: (i, 0)),
        compiler_params=pltpu.CompilerParams(
            dimension_semantics=("parallel",),    # v7x: shard batch steps over 2 TCs
            vmem_limit_bytes=32 * 1024 * 1024,    # footprint <1 MiB; plenty on v5e/v6e/v7x
        ),
        cost_estimate=cost,
    )(xa, w_slab, b_slab)
    return out[:B]


# ---------------------------------------------------------------------------
# Pure-JAX reference (mirrors the PyTorch forward; matmuls in bf16 like the kernel)
# ---------------------------------------------------------------------------
def reference_forward(x, action, layers):
    bf16, f32 = jnp.bfloat16, jnp.float32

    def lin(h, name):
        w, b = layers[name]
        return jnp.dot(h.astype(bf16), w.astype(bf16), preferred_element_type=f32) + b

    relu = lambda v: jnp.maximum(v, 0.0)
    h = relu(lin(x, "fc1"))
    h = relu(lin(h, "fc2"))
    mu = lin(h, "fc3")                       # reparameterize() returns mu unchanged
    cat = jnp.concatenate([mu, action], axis=1)
    t = relu(lin(cat, "fc1_contr"))
    t = relu(lin(t, "fc2_contr"))
    t = relu(lin(t, "fc3_contr"))
    z = lin(t, "fc4_contr")
    h = relu(lin(z, "fc5"))
    h = relu(lin(h, "fc6"))
    return lin(h, "fc7")


if __name__ == "__main__":
    # Small, module-consistent sizes; B chosen so the auto-picked tiling gives a 2-step grid.
    B = 256
    input_dim, hidden_dim, z_dim, action_dim, hidden_dim_head = 16, 32, 8, 4, 16

    key = jax.random.PRNGKey(0)
    kx, ka, kp = jax.random.split(key, 3)
    x = jax.random.normal(kx, (B, input_dim), jnp.float32)
    action = jax.random.normal(ka, (B, action_dim), jnp.float32)

    layers = init_layers(kp, input_dim, hidden_dim, z_dim, action_dim, hidden_dim_head)
    packed = pack_params(layers, input_dim, z_dim, action_dim)

    out = world_model_forward(x, action, packed)
    out = jax.block_until_ready(out)

    ref = reference_forward(x, action, layers)
    assert out.shape == (B, input_dim)
    max_err = float(jnp.max(jnp.abs(out - ref)))
    assert jnp.allclose(out, ref, atol=2e-3, rtol=2e-3), f"mismatch vs reference, max abs err {max_err}"

    print("KERNEL_OK")
</pallas_src>

<mosaic_0001>
module attributes {stable_mosaic.version = 11 : i64} {
  func.func @world_model_kernel(%arg0: i32, %arg1: memref<128x128xf32, #tpu.memory_space<vmem>>, %arg2: memref<1408x128xbf16, #tpu.memory_space<vmem>>, %arg3: memref<16x128xf32, #tpu.memory_space<vmem>>, %arg4: memref<128x16xf32, #tpu.memory_space<vmem>>) attributes {dimension_semantics = [#tpu.dimension_semantics<parallel>], iteration_bounds = array<i64: 2>, scalar_prefetch = 0 : i64, scratch_operands = 0 : i64, tpu.core_type = #tpu.core_type<tc>, window_params = [{transform_indices = @transform_0, window_bounds = array<i64: 128, 128>}, {pipeline_mode = #tpu.pipeline_mode<synchronous>, transform_indices = @transform_1, window_bounds = array<i64: 1408, 128>}, {pipeline_mode = #tpu.pipeline_mode<synchronous>, transform_indices = @transform_2, window_bounds = array<i64: 16, 128>}, {transform_indices = @transform_3, window_bounds = array<i64: 128, 16>}]} {
    %c0 = arith.constant 0 : index
    %c0_0 = arith.constant 0 : index
    %0 = vector.load %arg1[%c0, %c0_0] : memref<128x128xf32, #tpu.memory_space<vmem>>, vector<128x128xf32>
    %1 = arith.truncf %0 : vector<128x128xf32> to vector<128x128xbf16>
    %c0_1 = arith.constant 0 : index
    %c0_2 = arith.constant 0 : index
    %2 = vector.load %arg2[%c0_1, %c0_2] : memref<1408x128xbf16, #tpu.memory_space<vmem>>, vector<128x128xbf16>
    %cst = arith.constant dense<0.000000e+00> : vector<128x128xf32>
    %3 = tpu.matmul %1, %2, %cst {dimension_numbers = #tpu.dot_dimension_numbers<[1], [0], [0], [1], [0, 0, 1, 1], [], []>} : vector<128x128xbf16>, vector<128x128xbf16>, vector<128x128xf32> -> vector<128x128xf32>
    %c0_3 = arith.constant 0 : index
    %c0_4 = arith.constant 0 : index
    %4 = vector.load %arg3[%c0_3, %c0_4] : memref<16x128xf32, #tpu.memory_space<vmem>>, vector<1x128xf32>
    %5 = vector.broadcast %4 : vector<1x128xf32> to vector<128x128xf32>
    %6 = arith.addf %3, %5 : vector<128x128xf32>
    %cst_5 = arith.constant 0.000000e+00 : f32
    %7 = vector.broadcast %cst_5 : f32 to vector<128x128xf32>
    %8 = arith.maximumf %6, %7 : vector<128x128xf32>
    %9 = arith.truncf %8 : vector<128x128xf32> to vector<128x128xbf16>
    %c128 = arith.constant 128 : index
    %c0_6 = arith.constant 0 : index
    %10 = vector.load %arg2[%c128, %c0_6] : memref<1408x128xbf16, #tpu.memory_space<vmem>>, vector<128x128xbf16>
    %cst_7 = arith.constant dense<0.000000e+00> : vector<128x128xf32>
    %11 = tpu.matmul %9, %10, %cst_7 {dimension_numbers = #tpu.dot_dimension_numbers<[1], [0], [0], [1], [0, 0, 1, 1], [], []>} : vector<128x128xbf16>, vector<128x128xbf16>, vector<128x128xf32> -> vector<128x128xf32>
    %c1 = arith.constant 1 : index
    %c0_8 = arith.constant 0 : index
    %12 = vector.load %arg3[%c1, %c0_8] : memref<16x128xf32, #tpu.memory_space<vmem>>, vector<1x128xf32>
    %13 = vector.broadcast %12 : vector<1x128xf32> to vector<128x128xf32>
    %14 = arith.addf %11, %13 : vector<128x128xf32>
    %cst_9 = arith.constant 0.000000e+00 : f32
    %15 = vector.broadcast %cst_9 : f32 to vector<128x128xf32>
    %16 = arith.maximumf %14, %15 : vector<128x128xf32>
    %17 = arith.truncf %16 : vector<128x128xf32> to vector<128x128xbf16>
    %c256 = arith.constant 256 : index
    %c0_10 = arith.constant 0 : index
    %18 = vector.load %arg2[%c256, %c0_10] : memref<1408x128xbf16, #tpu.memory_space<vmem>>, vector<128x128xbf16>
    %cst_11 = arith.constant dense<0.000000e+00> : vector<128x128xf32>
    %19 = tpu.matmul %17, %18, %cst_11 {dimension_numbers = #tpu.dot_dimension_numbers<[1], [0], [0], [1], [0, 0, 1, 1], [], []>} : vector<128x128xbf16>, vector<128x128xbf16>, vector<128x128xf32> -> vector<128x128xf32>
    %c2 = arith.constant 2 : index
    %c0_12 = arith.constant 0 : index
    %20 = vector.load %arg3[%c2, %c0_12] : memref<16x128xf32, #tpu.memory_space<vmem>>, vector<1x128xf32>
    %21 = vector.broadcast %20 : vector<1x128xf32> to vector<128x128xf32>
    %22 = arith.addf %19, %21 : vector<128x128xf32>
    %23 = arith.truncf %22 : vector<128x128xf32> to vector<128x128xbf16>
    %c384 = arith.constant 384 : index
    %c0_13 = arith.constant 0 : index
    %24 = vector.load %arg2[%c384, %c0_13] : memref<1408x128xbf16, #tpu.memory_space<vmem>>, vector<128x128xbf16>
    %cst_14 = arith.constant dense<0.000000e+00> : vector<128x128xf32>
    %25 = tpu.matmul %23, %24, %cst_14 {dimension_numbers = #tpu.dot_dimension_numbers<[1], [0], [0], [1], [0, 0, 1, 1], [], []>} : vector<128x128xbf16>, vector<128x128xbf16>, vector<128x128xf32> -> vector<128x128xf32>
    %c512 = arith.constant 512 : index
    %c0_15 = arith.constant 0 : index
    %26 = vector.load %arg2[%c512, %c0_15] : memref<1408x128xbf16, #tpu.memory_space<vmem>>, vector<128x128xbf16>
    %cst_16 = arith.constant dense<0.000000e+00> : vector<128x128xf32>
    %27 = tpu.matmul %1, %26, %cst_16 {dimension_numbers = #tpu.dot_dimension_numbers<[1], [0], [0], [1], [0, 0, 1, 1], [], []>} : vector<128x128xbf16>, vector<128x128xbf16>, vector<128x128xf32> -> vector<128x128xf32>
    %28 = arith.addf %25, %27 : vector<128x128xf32>
    %c3 = arith.constant 3 : index
    %c0_17 = arith.constant 0 : index
    %29 = vector.load %arg3[%c3, %c0_17] : memref<16x128xf32, #tpu.memory_space<vmem>>, vector<1x128xf32>
    %30 = vector.broadcast %29 : vector<1x128xf32> to vector<128x128xf32>
    %31 = arith.addf %28, %30 : vector<128x128xf32>
    %cst_18 = arith.constant 0.000000e+00 : f32
    %32 = vector.broadcast %cst_18 : f32 to vector<128x128xf32>
    %33 = arith.maximumf %31, %32 : vector<128x128xf32>
    %34 = arith.truncf %33 : vector<128x128xf32> to vector<128x128xbf16>
    %c640 = arith.constant 640 : index
    %c0_19 = arith.constant 0 : index
    %35 = vector.load %arg2[%c640, %c0_19] : memref<1408x128xbf16, #tpu.memory_space<vmem>>, vector<128x128xbf16>
    %cst_20 = arith.constant dense<0.000000e+00> : vector<128x128xf32>
    %36 = tpu.matmul %34, %35, %cst_20 {dimension_numbers = #tpu.dot_dimension_numbers<[1], [0], [0], [1], [0, 0, 1, 1], [], []>} : vector<128x128xbf16>, vector<128x128xbf16>, vector<128x128xf32> -> vector<128x128xf32>
    %c4 = arith.constant 4 : index
    %c0_21 = arith.constant 0 : index
    %37 = vector.load %arg3[%c4, %c0_21] : memref<16x128xf32, #tpu.memory_space<vmem>>, vector<1x128xf32>
    %38 = vector.broadcast %37 : vector<1x128xf32> to vector<128x128xf32>
    %39 = arith.addf %36, %38 : vector<128x128xf32>
    %cst_22 = arith.constant 0.000000e+00 : f32
    %40 = vector.broadcast %cst_22 : f32 to vector<128x128xf32>
    %41 = arith.maximumf %39, %40 : vector<128x128xf32>
    %42 = arith.truncf %41 : vector<128x128xf32> to vector<128x128xbf16>
    %c768 = arith.constant 768 : index
    %c0_23 = arith.constant 0 : index
    %43 = vector.load %arg2[%c768, %c0_23] : memref<1408x128xbf16, #tpu.memory_space<vmem>>, vector<128x128xbf16>
    %cst_24 = arith.constant dense<0.000000e+00> : vector<128x128xf32>
    %44 = tpu.matmul %42, %43, %cst_24 {dimension_numbers = #tpu.dot_dimension_numbers<[1], [0], [0], [1], [0, 0, 1, 1], [], []>} : vector<128x128xbf16>, vector<128x128xbf16>, vector<128x128xf32> -> vector<128x128xf32>
    %c5 = arith.constant 5 : index
    %c0_25 = arith.constant 0 : index
    %45 = vector.load %arg3[%c5, %c0_25] : memref<16x128xf32, #tpu.memory_space<vmem>>, vector<1x128xf32>
    %46 = vector.broadcast %45 : vector<1x128xf32> to vector<128x128xf32>
    %47 = arith.addf %44, %46 : vector<128x128xf32>
    %cst_26 = arith.constant 0.000000e+00 : f32
    %48 = vector.broadcast %cst_26 : f32 to vector<128x128xf32>
    %49 = arith.maximumf %47, %48 : vector<128x128xf32>
    %50 = arith.truncf %49 : vector<128x128xf32> to vector<128x128xbf16>
    %c896 = arith.constant 896 : index
    %c0_27 = arith.constant 0 : index
    %51 = vector.load %arg2[%c896, %c0_27] : memref<1408x128xbf16, #tpu.memory_space<vmem>>, vector<128x128xbf16>
    %cst_28 = arith.constant dense<0.000000e+00> : vector<128x128xf32>
    %52 = tpu.matmul %50, %51, %cst_28 {dimension_numbers = #tpu.dot_dimension_numbers<[1], [0], [0], [1], [0, 0, 1, 1], [], []>} : vector<128x128xbf16>, vector<128x128xbf16>, vector<128x128xf32> -> vector<128x128xf32>
    %c6 = arith.constant 6 : index
    %c0_29 = arith.constant 0 : index
    %53 = vector.load %arg3[%c6, %c0_29] : memref<16x128xf32, #tpu.memory_space<vmem>>, vector<1x128xf32>
    %54 = vector.broadcast %53 : vector<1x128xf32> to vector<128x128xf32>
    %55 = arith.addf %52, %54 : vector<128x128xf32>
    %56 = arith.truncf %55 : vector<128x128xf32> to vector<128x128xbf16>
    %c1024 = arith.constant 1024 : index
    %c0_30 = arith.constant 0 : index
    %57 = vector.load %arg2[%c1024, %c0_30] : memref<1408x128xbf16, #tpu.memory_space<vmem>>, vector<128x128xbf16>
    %cst_31 = arith.constant dense<0.000000e+00> : vector<128x128xf32>
    %58 = tpu.matmul %56, %57, %cst_31 {dimension_numbers = #tpu.dot_dimension_numbers<[1], [0], [0], [1], [0, 0, 1, 1], [], []>} : vector<128x128xbf16>, vector<128x128xbf16>, vector<128x128xf32> -> vector<128x128xf32>
    %c7 = arith.constant 7 : index
    %c0_32 = arith.constant 0 : index
    %59 = vector.load %arg3[%c7, %c0_32] : memref<16x128xf32, #tpu.memory_space<vmem>>, vector<1x128xf32>
    %60 = vector.broadcast %59 : vector<1x128xf32> to vector<128x128xf32>
    %61 = arith.addf %58, %60 : vector<128x128xf32>
    %cst_33 = arith.constant 0.000000e+00 : f32
    %62 = vector.broadcast %cst_33 : f32 to vector<128x128xf32>
    %63 = arith.maximumf %61, %62 : vector<128x128xf32>
    %64 = arith.truncf %63 : vector<128x128xf32> to vector<128x128xbf16>
    %c1152 = arith.constant 1152 : index
    %c0_34 = arith.constant 0 : index
    %65 = vector.load %arg2[%c1152, %c0_34] : memref<1408x128xbf16, #tpu.memory_space<vmem>>, vector<128x128xbf16>
    %cst_35 = arith.constant dense<0.000000e+00> : vector<128x128xf32>
    %66 = tpu.matmul %64, %65, %cst_35 {dimension_numbers = #tpu.dot_dimension_numbers<[1], [0], [0], [1], [0, 0, 1, 1], [], []>} : vector<128x128xbf16>, vector<128x128xbf16>, vector<128x128xf32> -> vector<128x128xf32>
    %c8 = arith.constant 8 : index
    %c0_36 = arith.constant 0 : index
    %67 = vector.load %arg3[%c8, %c0_36] : memref<16x128xf32, #tpu.memory_space<vmem>>, vector<1x128xf32>
    %68 = vector.broadcast %67 : vector<1x128xf32> to vector<128x128xf32>
    %69 = arith.addf %66, %68 : vector<128x128xf32>
    %cst_37 = arith.constant 0.000000e+00 : f32
    %70 = vector.broadcast %cst_37 : f32 to vector<128x128xf32>
    %71 = arith.maximumf %69, %70 : vector<128x128xf32>
    %72 = arith.truncf %71 : vector<128x128xf32> to vector<128x128xbf16>
    %c1280 = arith.constant 1280 : index
    %c0_38 = arith.constant 0 : index
    %73 = vector.load %arg2[%c1280, %c0_38] : memref<1408x128xbf16, #tpu.memory_space<vmem>>, vector<128x128xbf16>
    %cst_39 = arith.constant dense<0.000000e+00> : vector<128x128xf32>
    %74 = tpu.matmul %72, %73, %cst_39 {dimension_numbers = #tpu.dot_dimension_numbers<[1], [0], [0], [1], [0, 0, 1, 1], [], []>} : vector<128x128xbf16>, vector<128x128xbf16>, vector<128x128xf32> -> vector<128x128xf32>
    %c9 = arith.constant 9 : index
    %c0_40 = arith.constant 0 : index
    %75 = vector.load %arg3[%c9, %c0_40] : memref<16x128xf32, #tpu.memory_space<vmem>>, vector<1x128xf32>
    %76 = vector.broadcast %75 : vector<1x128xf32> to vector<128x128xf32>
    %77 = arith.addf %74, %76 : vector<128x128xf32>
    %78 = vector.extract_strided_slice %77 {offsets = [0, 0], sizes = [128, 16], strides = [1, 1]} : vector<128x128xf32> to vector<128x16xf32>
    %c0_41 = arith.constant 0 : index
    %c0_42 = arith.constant 0 : index
    %79 = vector.load %arg4[%c0_41, %c0_42] : memref<128x16xf32, #tpu.memory_space<vmem>>, vector<128x16xf32>
    tpu.vector_store %arg4[%c0_41, %c0_42], %78 {strides = array<i32>} : memref<128x16xf32, #tpu.memory_space<vmem>>, vector<128x16xf32>,
    return
  }
  func.func @transform_0(%arg0: i32) -> (i32, i32) {
    %c0_i32 = arith.constant 0 : i32
    %c0_i32_0 = arith.constant 0 : i32
    return %arg0, %c0_i32 : i32, i32
  }
  func.func @transform_1(%arg0: i32) -> (i32, i32) {
    %c0_i32 = arith.constant 0 : i32
    %c0_i32_0 = arith.constant 0 : i32
    %c0_i32_1 = arith.constant 0 : i32
    return %c0_i32, %c0_i32_0 : i32, i32
  }
  func.func @transform_2(%arg0: i32) -> (i32, i32) {
    %c0_i32 = arith.constant 0 : i32
    %c0_i32_0 = arith.constant 0 : i32
    %c0_i32_1 = arith.constant 0 : i32
    return %c0_i32, %c0_i32_0 : i32, i32
  }
  func.func @transform_3(%arg0: i32) -> (i32, i32) {
    %c0_i32 = arith.constant 0 : i32
    %c0_i32_0 = arith.constant 0 : i32
    return %arg0, %c0_i32 : i32, i32
  }
}

</mosaic_0001>

<bundles_post_ra>
// kernel: tpu_custom_call.1
= control target key start
LH: loop header
LB: loop body
LE: loop exit
PB: predicated region body
PF: predicated region fallthrough
CT: control target
= control target key end

     0   :  { %8 = vsyncpa [#allocation3], 0  ;;  %s3602_s0 = inlined_call_operand.hbm [shape: f32[256,128], index: 0, kind: input, shape index: {}]   ;;  %s3603_s1 = inlined_call_operand.hbm [shape: bf16[1408,128], index: 1, kind: input, shape index: {}]   ;;  %s3604_s2 = inlined_call_operand.hbm [shape: f32[16,128], index: 2, kind: input, shape index: {}]   ;;  %s3605_s3 = inlined_call_operand.vmem [shape: f32[256,16], index: 3, kind: output, shape index: {}]  }
   0x1   :  { %10 = vsyncpa [#allocation3 + $0x1], 0 }
   0x2   :  { %11 = vsyncpa [#allocation5], 0  ;;  %s3330_s12 = smov 0   ;;  %s3332_s13 = smov 0  }
   0x3   :  { %s3334_s14 = smov 0   ;;  %s3336_s15 = smov 0  }
   0x4 LB: > { %s2371_s16 = sadd.s32 4294967295, %s3301_s15   ;;  %p37_p0 = scmp.ne.s32.totalorder %s3293_s13, %s3289_s12  ;;  %s3301_s15 = sphi %s3336_s15, %s3621_s15   ;;  %s3297_s14 = sphi %s3334_s14, %s3620_s14   ;;  %s3293_s13 = sphi %s3332_s13, %s3619_s13   ;;  %s3289_s12 = sphi %s3330_s12, %s3618_s12  }
   0x5   : > { %p3352_p1 = scmp.eq.s32.totalorder %s2371_s16, 0  ;;  %p2373_p2 = scmp.ge.s32.totalorder %s3301_s15, 1 }
   0x6   : > { %p116_p3 = scmp.lt.s32.totalorder %s3301_s15, 3  ;;  %s3303_s20 = smov [#allocation4]  }
   0x7   : > { %s3610_s17 = scalar_select %p3352_p1, 1, 0 }
   0x8   : > { %p3360_p4 = por %p3352_p1, %p37_p0  ;;  %p3364_p5 = pnand %p2373_p2, %p116_p3 }
   0x9   : > { %s128_s21 = sshll.u32 %s3303_s20, 4  ;;  %s3304_s23 = smov [#allocation6]   ;;  %s129_s21 = int_to_ptr.vmem [resolvable:$true] %s128_s21 }
   0xa   : > { %s3611_s18 = scalar_select %p3360_p4, 1, 0 }
   0xb   : > { %s3612_s19 = scalar_select %p3364_p5, 1, 0 }
   0xc   : > { %p3041_p6 = pneg %p3364_p5  ;;  %s141_s24 = sshll.u32 %s3304_s23, 4  ;;  %s142_s24 = int_to_ptr.vmem [resolvable:$true] %s141_s24 }
   0xd   : > { %s3194_s25 = scalar_lea.vmem %s129_s21, 11264  ;;  %p3202_p12 = scmp.lt.s32.totalorder %s129_s21, %s129_s21 }
   0xe   : > { %p3372_p7 = pnand %p3041_p6, %p3352_p1  ;;  %p3195_p9 = scmp.ne.s32.totalorder %s129_s21, %s3194_s25 }
   0xf   : > { %p3203_p13 = scmp.lt.s32.totalorder %s3194_s25, %s3194_s25 }
  0x10   : > { %p3185_p8 = pneg %p3372_p7 }
  0x11   : > { %p3204_p0 = por %p3203_p13, %p3202_p12 }
  0x12   : > { %p3197_p10 = pnand %p3195_p9, %p3185_p8 }
  0x14   : > { %p3198_p11 = pneg %p3197_p10 }
  0x16   : > { %p3205_p2 = pnand %p3204_p0, %p3198_p11 }
  0x18   : > { %3208 = shalt.err (!%p3205_p2)
}
  0x19   : > { %s3305_s26 = smov 64   ;;  %s3306_s27 = smov 4  }
  0x1a   : > { %3044 = dma.hbm_to_vmem [thread:$0]  (!%p3372_p7), %s3603_s1, 11264, %s129_s21, [#allocation5], %s3305_s26, %s3305_s26, %s3306_s27  }
  0x1b   : > { %s3220_s30 = scalar_lea.vmem %s142_s24, 256  ;;  %p3228_p10 = scmp.lt.s32.totalorder %s142_s24, %s142_s24 }
  0x1c   : > { %p3221_p3 = scmp.ne.s32.totalorder %s142_s24, %s3220_s30  ;;  %p3229_p1 = scmp.lt.s32.totalorder %s3220_s30, %s3220_s30 }
  0x1e   : > { %p3223_p6 = pnand %p3221_p3, %p3185_p8  ;;  %p3230_p12 = por %p3229_p1, %p3228_p10 }
  0x20   : > { %p3224_p9 = pneg %p3223_p6 }
  0x22   : > { %p3231_p11 = pnand %p3230_p12, %p3224_p9 }
  0x24   : > { %3234 = shalt.err (!%p3231_p11)
}
  0x25   : > { %s3307_s4 = smov 128   ;;  %s3308_s5 = smov 8  }
  0x26   : > { %3047 = dma.hbm_to_vmem [thread:$0]  (!%p3372_p7), %s3604_s2, 256, %s142_s24, [#allocation5], %s3307_s4, %s3307_s4, %s3308_s5  }
  0x27   : > { %s3398_s8 = sadd.s32 1, %s3301_s15   ;;  %s24_s10 = sadd.s32 1, %s3297_s14 }
  0x28   : > { %s21_s9 = ssub.s32 %s3301_s15, %s3398_s8  ;;  %p31_p8 = scmp.ne.s32.totalorder %s3297_s14, %s3293_s13 }
  0x29   : > { %p22_p1 = scmp.eq.s32.totalorder %s21_s9, 0  ;;  %p32_p13 = scmp.eq.s32.totalorder %s3301_s15, 0 }
  0x2a   : > { %p3054_p2 = scmp.lt.s32.totalorder %s3301_s15, 2  ;;  %s155_s12 = sand.u32 1, %s3297_s14  }
  0x2b   : > { %s3407_s11 = scalar_select %p22_p1, %s3297_s14, %s24_s10  }
  0x2c   : > { %p33_p0 = por %p32_p13, %p31_p8  ;;  %s2486_s20 = sshll.u32 %s3301_s15, 11 }
  0x2d   : > { %s2377_s21 = sshll.u32 %s155_s12, 7  ;;  %s3415_s25 = scalar_lea.hbm %s3602_s0, %s2486_s20 }
  0x2e   : > { %s159_s24 = scalar_lea.vmem [#allocation2], %s2377_s21  ;;  %p3417_p7 = pnand %p3054_p2, %p33_p0 }
  0x2f   : > { %s166_s26 = sshll.u32 %s159_s24, 4  ;;  %s3423_s28 = scalar_lea.sflag [#allocation3], %s155_s12  ;;  %s3421_s26 = int_to_ptr.vmem [resolvable:$true] %s166_s26 }
  0x30   : > { %s3235_s29 = scalar_lea.hbm %s3415_s25, 2048  ;;  %p3237_p6 = pneg %p3417_p7 }
  0x31   : > { %p3236_p3 = scmp.ne.s32.totalorder %s3415_s25, %s3235_s29  ;;  %s3240_s7 = scalar_lea.hbm %s3602_s0, 4096 }
  0x32   : > { %p3241_p12 = scmp.lt.s32.totalorder %s3415_s25, %s3602_s0  ;;  %p3242_p11 = scmp.lt.s32.totalorder %s3240_s7, %s3235_s29 }
  0x33   : > { %p3238_p9 = pnand %p3237_p6, %p3236_p3 }
  0x34   : > { %p3243_p1 = por %p3242_p11, %p3241_p12 }
  0x35   : > { %p3239_p10 = pneg %p3238_p9 }
  0x37   : > { %p3244_p8 = pnand %p3243_p1, %p3239_p10 }
  0x39   : > { %3247 = shalt.err (!%p3244_p8)
}
  0x3a   : > { %s3248_s12 = scalar_lea.vmem %s3421_s26, 2048  ;;  %s3309_s20 = smov [#allocation2]  }
  0x3b   : > { %p3249_p13 = scmp.ne.s32.totalorder %s3421_s26, %s3248_s12  ;;  %s3253_s21 = sshll.u32 %s3309_s20, 4  ;;  %s3254_s21 = int_to_ptr.vmem [resolvable:$false] %s3253_s21 }
  0x3c   : > { %s3255_s22 = scalar_lea.vmem %s3254_s21, 4096  ;;  %p3256_p3 = scmp.lt.s32.totalorder %s3421_s26, %s3254_s21 }
  0x3d   : > { %p3251_p0 = pnand %p3249_p13, %p3237_p6  ;;  %p3257_p9 = scmp.lt.s32.totalorder %s3255_s22, %s3248_s12 }
  0x3f   : > { %p3252_p2 = pneg %p3251_p0  ;;  %p3258_p4 = por %p3257_p9, %p3256_p3 }
  0x41   : > { %p3259_p5 = pnand %p3258_p4, %p3252_p2 }
  0x43   : > { %3262 = shalt.err (!%p3259_p5)
}
  0x44   : > { %3051 = dma.hbm_to_vmem [thread:$0]  (!%p3417_p7), %s3415_s25, 2048, %s3421_s26, %s3423_s28, %s3307_s4, %s3307_s4, %s3308_s5  }
  0x45   : > { %p3615_p6 = scmp.ne.s32.totalorder %s3612_s19, 0 }
  0x46   : > { %s180_s23 = sand.u32 (!%p3615_p6), 1, %s3293_s13   ;;  %p3616_p4 = scmp.ne.s32.totalorder (!%p3615_p6), %s3611_s18, 0 }
  0x47   : > { %178 = sbr.rel (%p3615_p6) target bundleno = 2191 (0x88f), region = 32  ;;  %s2381_s24 = sshll.u32 (!%p3615_p6), %s180_s23, 7 }
  0x48   : > { %s181_s29 = scalar_lea.sflag (!%p3615_p6), [#allocation3], %s180_s23  ;;  %s3450_s30 = scalar_lea.vmem (!%p3615_p6), [#allocation2], %s2381_s24 }
  0x4c   : > { %3280 = dma.done.wait (%p3616_p4), %s181_s29, 2048  }
  0x4d   : > { %3282 = vsyncadd (%p3616_p4), %s181_s29, 4294965248  ;;  %p3617_p5 = scmp.ne.s32.totalorder %s3610_s17, 0 }
  0x4f   : > { %3284 = dma.done.wait (%p3617_p5), [#allocation5], 11520  }
  0x50   : > { %3286 = vsyncadd (%p3617_p5), [#allocation5], 4294955776  ;;  %v3095_v0 = vld [vmem:[#allocation4 + $0x38] sm:$0xff]   ;;  %v3096_v1 = vld [vmem:[#allocation4 + $0x30] sm:$0xff]   ;;  %s2384_s17 = sshll.u32 %s2371_s16, 4  ;;  %vm2268_vm0 = vcmask 130048  }
  0x51   : > { %2663 = vmatprep.subr.bf16.mxu0 %v3095_v0  ;;  %v3097_v2 = vld [vmem:[#allocation4 + $0x28] sm:$0xff]   ;;  %v3098_v3 = vld [vmem:[#allocation4 + $0x20] sm:$0xff]   ;;  %v3099_v7 = vld [vmem:[#allocation4 + $0x18] sm:$0xff]   ;;  %p217_p7 = scmp.lt.s32.totalorder %s2384_s17, 31 }
  0x52   : > { %2664 = vmatpush3.bf16.msra.mxu0 %v3095_v0  ;;  %v223_v4 = vld [vmem:[%s3450_s30] sm:$0xff]  ;;  %v224_v5 = vld [vmem:[%s3450_s30 + $0x8] sm:$0xff]  ;;  %v3103_v8 = vld [vmem:[#allocation4 + $0x78] sm:$0xff]  }
  0x53   : > { %2665 = vmatprep.subr.bf16.mxu0 %v3096_v1  ;;  %v3462_v6 = vpack.c.bf16 %v224_v5, %v223_v4  ;;  %v3104_v9 = vld [vmem:[#allocation4 + $0x70] sm:$0xff]   ;;  %2695 = vmatprep.subr.bf16.mxu1 %v3103_v8  ;;  %v3101_v11 = vld [vmem:[#allocation4 + $0x8] sm:$0xff]   ;;  %v3106_v13 = vld [vmem:[#allocation4 + $0x60] sm:$0xff]   ;;  %s3623_s17 = smov (!%p217_p7, %s2384_s17), 31 }
  0x54   : > { %v3100_v10 = vld [vmem:[#allocation4 + $0x10] sm:$0xff]   ;;  %2696 = vmatpush3.bf16.msra.mxu1 %v3103_v8  ;;  %v3105_v12 = vld [vmem:[#allocation4 + $0x68] sm:$0xff]   ;;  %v3102_v14 = vld [vmem:[#allocation4] sm:$0xff]   ;;  %s2385_s18 = sshll.u32 %s3623_s17, 3 }
  0x55   : > { %2679 = vmatprep.mubr.bf16.mxu0 %v3462_v6  ;;  %2697 = vmatprep.subr.bf16.mxu1 %v3104_v9  ;;  %v3107_v15 = vld [vmem:[#allocation4 + $0x58] sm:$0xff]   ;;  %v225_v16 = vld [vmem:[%s3450_s30 + $0x10] sm:$0xff]  ;;  %v227_v18 = vld [vmem:[%s3450_s30 + $0x20] sm:$0xff]  ;;  %s3555_s5 = scalar_lea.vmem %s3605_s3, %s2385_s18 }
  0x56   : > { %2666 = vmatpush3.bf16.msra.mxu0 %v3096_v1  ;;  %v226_v17 = vld [vmem:[%s3450_s30 + $0x18] sm:$0xff]  ;;  %v228_v19 = vld [vmem:[%s3450_s30 + $0x28] sm:$0xff]  ;;  %v229_v22 = vld [vmem:[%s3450_s30 + $0x30] sm:$0xff] }
  0x57   : > { %2667 = vmatprep.subr.bf16.mxu0 %v3097_v2  ;;  %v3469_v20 = vpack.c.bf16 %v226_v17, %v225_v16  ;;  %v3471_v21 = vpack.c.bf16 %v228_v19, %v227_v18  ;;  %v230_v23 = vld [vmem:[%s3450_s30 + $0x38] sm:$0xff]  ;;  %v231_v24 = vld [vmem:[%s3450_s30 + $0x40] sm:$0xff]  ;;  %v232_v25 = vld [vmem:[%s3450_s30 + $0x48] sm:$0xff] }
  0x58   : > { %2698 = vmatpush3.bf16.msra.mxu1 %v3104_v9  ;;  %v3479_v26 = vpack.c.bf16 %v230_v23, %v229_v22  ;;  %v3481_v27 = vpack.c.bf16 %v232_v25, %v231_v24  ;;  %v233_v28 = vld [vmem:[%s3450_s30 + $0x50] sm:$0xff]  ;;  %v234_v29 = vld [vmem:[%s3450_s30 + $0x58] sm:$0xff]  ;;  %v235_v30 = vld [vmem:[%s3450_s30 + $0x60] sm:$0xff] }
  0x59   : > { %2699 = vmatprep.subr.bf16.mxu1 %v3105_v12  ;;  %v236_v31 = vld [vmem:[%s3450_s30 + $0x68] sm:$0xff]  ;;  %v3489_v32 = vpack.c.bf16 %v234_v29, %v233_v28  ;;  %v237_v34 = vld [vmem:[%s3450_s30 + $0x70] sm:$0xff]  ;;  %v238_v35 = vld [vmem:[%s3450_s30 + $0x78] sm:$0xff] }
  0x5a   : > { %2668 = vmatpush3.bf16.msra.mxu0 %v3097_v2  ;;  %v3491_v33 = vpack.c.bf16 %v236_v31, %v235_v30  ;;  %v3497_v36 = vpack.c.bf16 %v238_v35, %v237_v34  ;;  %v3108_v37 = vld [vmem:[#allocation4 + $0x50] sm:$0xff]   ;;  %v3109_v38 = vld [vmem:[#allocation4 + $0x48] sm:$0xff]   ;;  %v3110_v39 = vld [vmem:[#allocation4 + $0x40] sm:$0xff]  }
  0x5b   : > { %2669 = vmatprep.subr.bf16.mxu0 %v3098_v3  ;;  %v3111_v40 = vld [vmem:[#allocation4 + $0xb8] sm:$0xff]   ;;  %v3112_v41 = vld [vmem:[#allocation4 + $0xb0] sm:$0xff]   ;;  %v3113_v42 = vld [vmem:[#allocation4 + $0xa8] sm:$0xff]  }
  0x5c   : > { %2700 = vmatpush3.bf16.msra.mxu1 %v3105_v12  ;;  %v3114_v43 = vld [vmem:[#allocation4 + $0xa0] sm:$0xff]   ;;  %v3115_v44 = vld [vmem:[#allocation4 + $0x98] sm:$0xff]  }
  0x5d   : > { %2701 = vmatprep.subr.bf16.mxu1 %v3106_v13  ;;  %v2386_v47 = vld [vmem:[#allocation6] ss:$0 sm:$0xff] }
  0x5e   : > { %2670 = vmatpush3.bf16.msra.mxu0 %v3098_v3 }
  0x5f   : > { %2671 = vmatprep.subr.bf16.mxu0 %v3099_v7 }
  0x60   : > { %2702 = vmatpush3.bf16.msra.mxu1 %v3106_v13 }
  0x61   : > { %2703 = vmatprep.subr.bf16.mxu1 %v3107_v15 }
  0x62   : > { %2672 = vmatpush3.bf16.msra.mxu0 %v3099_v7 }
  0x63   : > { %2673 = vmatprep.subr.bf16.mxu0 %v3100_v10 }
  0x64   : > { %2704 = vmatpush3.bf16.msra.mxu1 %v3107_v15 }
  0x65   : > { %2705 = vmatprep.subr.bf16.mxu1 %v3108_v37 }
  0x66   : > { %2674 = vmatpush3.bf16.msra.mxu0 %v3100_v10 }
  0x67   : > { %2675 = vmatprep.subr.bf16.mxu0 %v3101_v11 }
  0x68   : > { %2706 = vmatpush3.bf16.msra.mxu1 %v3108_v37 }
  0x69   : > { %2707 = vmatprep.subr.bf16.mxu1 %v3109_v38 }
  0x6a   : > { %2676 = vmatpush3.bf16.msra.mxu0 %v3101_v11 }
  0x6b   : > { %2677 = vmatprep.subr.bf16.mxu0 %v3102_v14 }
  0x6c   : > { %2708 = vmatpush3.bf16.msra.mxu1 %v3109_v38 }
  0x6d   : > { %2709 = vmatprep.subr.bf16.mxu1 %v3110_v39 }
  0x6e   : > { %2678 = vmatpush3.bf16.msra.mxu0 %v3102_v14 }
  0x6f   : > { %2727 = vmatprep.subr.bf16.mxu0 %v3111_v40 }
  0x70   : > { %2710 = vmatpush3.bf16.msra.mxu1 %v3110_v39 }
  0x71   : > { %2680 = vmatmul.mubr.bf16.vlgmr.msra.gmra.mxu0 %v3469_v20 }
  0x72   : > { %2683 = vmatprep.mubr.bf16.mxu0 %v3471_v21  ;;  %2728 = vmatpush3.bf16.msra.mxu0 %v3111_v40 }
  0x73   : > { %2729 = vmatprep.subr.bf16.mxu0 %v3112_v41 }
  0x76   : > { %2730 = vmatpush3.bf16.msra.mxu0 %v3112_v41 }
  0x77   : > { %2731 = vmatprep.subr.bf16.mxu0 %v3113_v42 }
  0x79   : > { %2684 = vmatmul.mubr.bf16.gmra.mxu0 %v3479_v26 }
  0x7a   : > { %2687 = vmatprep.mubr.bf16.mxu0 %v3481_v27  ;;  %2732 = vmatpush3.bf16.msra.mxu0 %v3113_v42 }
  0x7b   : > { %2733 = vmatprep.subr.bf16.mxu0 %v3114_v43 }
  0x7e   : > { %2734 = vmatpush3.bf16.msra.mxu0 %v3114_v43 }
  0x7f   : > { %2735 = vmatprep.subr.bf16.mxu0 %v3115_v44 }
  0x81   : > { %2688 = vmatmul.mubr.bf16.gmra.mxu0 %v3489_v32 }
  0x82   : > { %2691 = vmatprep.mubr.bf16.mxu0 %v3491_v33  ;;  %2736 = vmatpush3.bf16.msra.mxu0 %v3115_v44 }
  0x89   : > { %2692 = vmatmul.mubr.bf16.gmra.mxu0 %v3497_v36 }
 0x131   : > { %v2681_v45 = vpop.f32.mrf.mxu0 }
 0x132   : > { %v359_v51 = vadd.f32 %v2681_v45, %v2386_v47 }
 0x133   : > { %v350_v46 = vpop.f32.mrf.mxu0 }
 0x134   : > { %v351_v49 = vadd.f32 %v2386_v47, %v350_v46  ;;  %v415_v58 = vmax.f32 %v359_v51, 0.0  ;;  %v3116_v46 = vld [vmem:[#allocation4 + $0x90] sm:$0xff]   ;;  %v3121_v51 = vld [vmem:[#allocation4 + $0xf8] sm:$0xff]  }
 0x135   : > { %v2682_v48 = vpop.f32.mrf.mxu0  ;;  %2737 = vmatprep.subr.bf16.mxu0 %v3116_v46 }
 0x136   : > { %v362_v50 = vadd.f32 %v2682_v48, %v2386_v47  ;;  %v413_v56 = vmax.f32 %v351_v49, 0.0  ;;  %2738 = vmatpush3.bf16.msra.mxu0 %v3116_v46  ;;  %v3117_v48 = vld [vmem:[#allocation4 + $0x88] sm:$0xff]   ;;  %v3118_v49 = vld [vmem:[#allocation4 + $0x80] sm:$0xff]  }
 0x137   : > { %v353_v52 = vpop.f32.mrf.mxu0  ;;  %2739 = vmatprep.subr.bf16.mxu0 %v3117_v48 }
 0x138   : > { %v354_v53 = vadd.f32 %v2386_v47, %v353_v52  ;;  %v416_v54 = vmax.f32 %v362_v50, 0.0  ;;  %v3120_v50 = vld [vmem:[#allocation4 + $0x130] sm:$0xff]   ;;  %v3122_v52 = vld [vmem:[#allocation4 + $0x128] sm:$0xff]  }
 0x139   : > { %v2685_v55 = vpop.f32.mrf.mxu0 }
 0x13a   : > { %v414_v57 = vmax.f32 %v354_v53, 0.0  ;;  %v430_v61 = vpack.c.bf16 %v416_v54, %v415_v58  ;;  %v375_v1 = vadd.f32 %v2685_v55, %v2386_v47  ;;  %2740 = vmatpush3.bf16.msra.mxu0 %v3117_v48  ;;  %v3126_v53 = vld [vmem:[#allocation4 + $0x118] sm:$0xff]   ;;  %v3128_v54 = vld [vmem:[#allocation4 + $0x110] sm:$0xff]   ;;  %v3130_v55 = vld [vmem:[#allocation4 + $0x108] sm:$0xff]  }
 0x13b   : > { %v366_v59 = vpop.f32.mrf.mxu0  ;;  %2741 = vmatprep.subr.bf16.mxu0 %v3118_v49  ;;  %v3501_v58 = vld [vmem:[#allocation6 + $0x1] ss:$0 sm:$0xff] }
 0x13c   : > { %v429_v60 = vpack.c.bf16 %v414_v57, %v413_v56  ;;  %v367_v63 = vadd.f32 %v2386_v47, %v366_v59  ;;  %v419_v9 = vmax.f32 %v375_v1, 0.0 }
 0x13d   : > { %v2686_v62 = vpop.f32.mrf.mxu0 }
 0x13e   : > { %v378_v0 = vadd.f32 %v2686_v62, %v2386_v47  ;;  %2711 = vmatprep.mubr.bf16.mxu1 %v429_v60  ;;  %v417_v7 = vmax.f32 %v367_v63, 0.0  ;;  %2742 = vmatpush3.bf16.msra.mxu0 %v3118_v49 }
 0x13f   : > { %v369_v2 = vpop.f32.mrf.mxu0  ;;  %2712 = vmatmul.mubr.bf16.vlgmr.msra.gmra.mxu1 %v430_v61  ;;  %2791 = vmatprep.subr.bf16.mxu0 %v3121_v51 }
 0x140   : > { %v370_v3 = vadd.f32 %v2386_v47, %v369_v2  ;;  %v420_v4 = vmax.f32 %v378_v0, 0.0 }
 0x141   : > { %v2689_v5 = vpop.f32.mrf.mxu0 }
 0x142   : > { %v418_v8 = vmax.f32 %v370_v3, 0.0  ;;  %v432_v12 = vpack.c.bf16 %v420_v4, %v419_v9  ;;  %v391_v16 = vadd.f32 %v2689_v5, %v2386_v47 }
 0x143   : > { %v382_v10 = vpop.f32.mrf.mxu0 }
 0x144   : > { %v431_v11 = vpack.c.bf16 %v418_v8, %v417_v7  ;;  %v383_v14 = vadd.f32 %v2386_v47, %v382_v10  ;;  %v423_v25 = vmax.f32 %v391_v16, 0.0 }
 0x145   : > { %v2690_v13 = vpop.f32.mrf.mxu0 }
 0x146   : > { %v394_v15 = vadd.f32 %v2690_v13, %v2386_v47  ;;  %2715 = vmatprep.mubr.bf16.mxu1 %v431_v11  ;;  %v421_v23 = vmax.f32 %v383_v14, 0.0  ;;  %v3123_v11 = vld [vmem:[#allocation4 + $0xf0] sm:$0xff]  }
 0x147   : > { %v385_v17 = vpop.f32.mrf.mxu0  ;;  %2716 = vmatmul.mubr.bf16.gmra.mxu1 %v432_v12 }
 0x148   : > { %v386_v18 = vadd.f32 %v2386_v47, %v385_v17  ;;  %v424_v19 = vmax.f32 %v394_v15, 0.0 }
 0x149   : > { %v2693_v22 = vpop.f32.mrf.mxu0 }
 0x14a   : > { %v422_v24 = vmax.f32 %v386_v18, 0.0  ;;  %v434_v30 = vpack.c.bf16 %v424_v19, %v423_v25  ;;  %v407_v37 = vadd.f32 %v2693_v22, %v2386_v47  ;;  %v3125_v19 = vld [vmem:[#allocation4 + $0xe8] sm:$0xff]  }
 0x14b   : > { %v398_v28 = vpop.f32.mrf.mxu0 }
 0x14c   : > { %v433_v29 = vpack.c.bf16 %v422_v24, %v421_v23  ;;  %v399_v34 = vadd.f32 %v2386_v47, %v398_v28  ;;  %v427_v43 = vmax.f32 %v407_v37, 0.0 }
 0x14d   : > { %v2694_v31 = vpop.f32.mrf.mxu0 }
 0x14e   : > { %v410_v35 = vadd.f32 %v2694_v31, %v2386_v47  ;;  %2719 = vmatprep.mubr.bf16.mxu1 %v433_v29  ;;  %v425_v41 = vmax.f32 %v399_v34, 0.0  ;;  %v3127_v31 = vld [vmem:[#allocation4 + $0xe0] sm:$0xff]  }
 0x14f   : > { %v401_v38 = vpop.f32.mrf.mxu0  ;;  %2720 = vmatmul.mubr.bf16.gmra.mxu1 %v434_v30 }
 0x150   : > { %v402_v39 = vadd.f32 %v2386_v47, %v401_v38  ;;  %v428_v40 = vmax.f32 %v410_v35, 0.0  ;;  %v3119_v47 = vld [vmem:[#allocation4 + $0x138] sm:$0xff]  }
 0x151   : > { %2759 = vmatprep.subr.bf16.mxu1 %v3119_v47 }
 0x152   : > { %v426_v42 = vmax.f32 %v402_v39, 0.0  ;;  %v436_v45 = vpack.c.bf16 %v428_v40, %v427_v43  ;;  %2760 = vmatpush3.bf16.msra.mxu1 %v3119_v47 }
 0x153   : > { %2761 = vmatprep.subr.bf16.mxu1 %v3120_v50 }
 0x154   : > { %v435_v44 = vpack.c.bf16 %v426_v42, %v425_v41  ;;  %v3129_v42 = vld [vmem:[#allocation4 + $0xd8] sm:$0xff]  }
 0x156   : > { %2723 = vmatprep.mubr.bf16.mxu1 %v435_v44  ;;  %2762 = vmatpush3.bf16.msra.mxu1 %v3120_v50  ;;  %v3131_v50 = vld [vmem:[#allocation4 + $0xd0] sm:$0xff]  }
 0x157   : > { %2724 = vmatmul.mubr.bf16.gmra.mxu1 %v436_v45  ;;  %2763 = vmatprep.subr.bf16.mxu1 %v3122_v52 }
 0x158   : > { %2775 = vmatprep.mubr.bf16.mxu1 %v3462_v6  ;;  %v3124_v6 = vld [vmem:[#allocation4 + $0x120] sm:$0xff]  }
 0x15a   : > { %2764 = vmatpush3.bf16.msra.mxu1 %v3122_v52 }
 0x15b   : > { %2765 = vmatprep.subr.bf16.mxu1 %v3124_v6 }
 0x15e   : > { %2766 = vmatpush3.bf16.msra.mxu1 %v3124_v6 }
 0x15f   : > { %2767 = vmatprep.subr.bf16.mxu1 %v3126_v53 }
 0x162   : > { %2768 = vmatpush3.bf16.msra.mxu1 %v3126_v53 }
 0x163   : > { %2769 = vmatprep.subr.bf16.mxu1 %v3128_v54 }
 0x166   : > { %2770 = vmatpush3.bf16.msra.mxu1 %v3128_v54 }
 0x167   : > { %2771 = vmatprep.subr.bf16.mxu1 %v3130_v55 }
 0x16a   : > { %2772 = vmatpush3.bf16.msra.mxu1 %v3130_v55 }
 0x1ff   : > { %v2713_v56 = vpop.f32.mrf.mxu1 }
 0x200   : > { %v549_v62 = vadd.f32 %v2713_v56, %v3501_v58 }
 0x201   : > { %v540_v57 = vpop.f32.mrf.mxu1 }
 0x202   : > { %v541_v60 = vadd.f32 %v3501_v58, %v540_v57  ;;  %v605_v5 = vmax.f32 %v549_v62, 0.0  ;;  %v3132_v62 = vld [vmem:[#allocation4 + $0x100] sm:$0xff]  }
 0x203   : > { %v2714_v59 = vpop.f32.mrf.mxu1  ;;  %2773 = vmatprep.subr.bf16.mxu1 %v3132_v62 }
 0x204   : > { %v552_v61 = vadd.f32 %v2714_v59, %v3501_v58  ;;  %v603_v3 = vmax.f32 %v541_v60, 0.0  ;;  %2774 = vmatpush3.bf16.msra.mxu1 %v3132_v62 }
 0x205   : > { %v543_v63 = vpop.f32.mrf.mxu1 }
 0x206   : > { %v544_v0 = vadd.f32 %v3501_v58, %v543_v63  ;;  %v606_v1 = vmax.f32 %v552_v61, 0.0  ;;  %v3133_v63 = vld [vmem:[#allocation4 + $0xc8] sm:$0xff]  }
 0x207   : > { %v2717_v2 = vpop.f32.mrf.mxu1  ;;  %2776 = vmatmul.mubr.bf16.vlgmr.msra.gmra.mxu1 %v3469_v20  ;;  %v3137_v20 = vld [vmem:[#allocation4 + $0x168] sm:$0xff]  }
 0x208   : > { %v604_v4 = vmax.f32 %v544_v0, 0.0  ;;  %v620_v9 = vpack.c.bf16 %v606_v1, %v605_v5  ;;  %v565_v14 = vadd.f32 %v2717_v2, %v3501_v58  ;;  %2779 = vmatprep.mubr.bf16.mxu1 %v3471_v21  ;;  %v3135_v0 = vld [vmem:[#allocation4 + $0x178] sm:$0xff]   ;;  %v3136_v1 = vld [vmem:[#allocation4 + $0x170] sm:$0xff]   ;;  %v3138_v21 = vld [vmem:[#allocation4 + $0x160] sm:$0xff]  }
 0x209   : > { %v556_v7 = vpop.f32.mrf.mxu1  ;;  %2823 = vmatprep.subr.bf16.mxu1 %v3135_v0  ;;  %v2404_v2 = vld [vmem:[#allocation6 + $0x2] ss:$0 sm:$0xff] }
 0x20a   : > { %v619_v8 = vpack.c.bf16 %v604_v4, %v603_v3  ;;  %v557_v12 = vadd.f32 %v3501_v58, %v556_v7  ;;  %v609_v24 = vmax.f32 %v565_v14, 0.0  ;;  %2824 = vmatpush3.bf16.msra.mxu1 %v3135_v0 }
 0x20b   : > { %v2718_v10 = vpop.f32.mrf.mxu1  ;;  %2825 = vmatprep.subr.bf16.mxu1 %v3136_v1 }
 0x20c   : > { %v568_v13 = vadd.f32 %v2718_v10, %v3501_v58  ;;  %2743 = vmatprep.mubr.bf16.mxu0 %v619_v8  ;;  %v607_v22 = vmax.f32 %v557_v12, 0.0 }
 0x20d   : > { %v559_v15 = vpop.f32.mrf.mxu1  ;;  %2744 = vmatmul.mubr.bf16.vlgmr.msra.gmra.mxu0 %v620_v9 }
 0x20e   : > { %v560_v16 = vadd.f32 %v3501_v58, %v559_v15  ;;  %2792 = vmatpush3.bf16.msra.mxu0 %v3121_v51  ;;  %v610_v17 = vmax.f32 %v568_v13, 0.0  ;;  %2826 = vmatpush3.bf16.msra.mxu1 %v3136_v1 }
 0x20f   : > { %v2721_v18 = vpop.f32.mrf.mxu1  ;;  %2793 = vmatprep.subr.bf16.mxu0 %v3123_v11  ;;  %2780 = vmatmul.mubr.bf16.gmra.mxu1 %v3479_v26  ;;  %v3139_v26 = vld [vmem:[#allocation4 + $0x158] sm:$0xff]  }
 0x210   : > { %v608_v23 = vmax.f32 %v560_v16, 0.0  ;;  %v622_v29 = vpack.c.bf16 %v610_v17, %v609_v24  ;;  %v581_v37 = vadd.f32 %v2721_v18, %v3501_v58  ;;  %2783 = vmatprep.mubr.bf16.mxu1 %v3481_v27  ;;  %2827 = vmatprep.subr.bf16.mxu1 %v3137_v20 }
 0x211   : > { %v572_v25 = vpop.f32.mrf.mxu1 }
 0x212   : > { %v621_v28 = vpack.c.bf16 %v608_v23, %v607_v22  ;;  %2794 = vmatpush3.bf16.msra.mxu0 %v3123_v11  ;;  %v573_v34 = vadd.f32 %v3501_v58, %v572_v25  ;;  %v613_v45 = vmax.f32 %v581_v37, 0.0  ;;  %2828 = vmatpush3.bf16.msra.mxu1 %v3137_v20 }
 0x213   : > { %v2722_v30 = vpop.f32.mrf.mxu1  ;;  %2795 = vmatprep.subr.bf16.mxu0 %v3125_v19  ;;  %2829 = vmatprep.subr.bf16.mxu1 %v3138_v21 }
 0x214   : > { %v584_v35 = vadd.f32 %v2722_v30, %v3501_v58  ;;  %2747 = vmatprep.mubr.bf16.mxu0 %v621_v28  ;;  %v611_v43 = vmax.f32 %v573_v34, 0.0 }
 0x215   : > { %v575_v38 = vpop.f32.mrf.mxu1  ;;  %2748 = vmatmul.mubr.bf16.gmra.mxu0 %v622_v29 }
 0x216   : > { %v576_v39 = vadd.f32 %v3501_v58, %v575_v38  ;;  %2796 = vmatpush3.bf16.msra.mxu0 %v3125_v19  ;;  %v614_v40 = vmax.f32 %v584_v35, 0.0  ;;  %2830 = vmatpush3.bf16.msra.mxu1 %v3138_v21 }
 0x217   : > { %v2725_v41 = vpop.f32.mrf.mxu1  ;;  %2797 = vmatprep.subr.bf16.mxu0 %v3127_v31  ;;  %2784 = vmatmul.mubr.bf16.gmra.mxu1 %v3489_v32 }
 0x218   : > { %v612_v44 = vmax.f32 %v576_v39, 0.0  ;;  %v624_v49 = vpack.c.bf16 %v614_v40, %v613_v45  ;;  %v597_v6 = vadd.f32 %v2725_v41, %v3501_v58  ;;  %2787 = vmatprep.mubr.bf16.mxu1 %v3491_v33  ;;  %2831 = vmatprep.subr.bf16.mxu1 %v3139_v26 }
 0x219   : > { %v588_v46 = vpop.f32.mrf.mxu1 }
 0x21a   : > { %v623_v48 = vpack.c.bf16 %v612_v44, %v611_v43  ;;  %2798 = vmatpush3.bf16.msra.mxu0 %v3127_v31  ;;  %v589_v51 = vadd.f32 %v3501_v58, %v588_v46  ;;  %v617_v59 = vmax.f32 %v597_v6, 0.0  ;;  %2832 = vmatpush3.bf16.msra.mxu1 %v3139_v26  ;;  %v3146_v6 = vld [vmem:[#allocation4 + $0x1a0] sm:$0xff]  }
 0x21b   : > { %v2726_v47 = vpop.f32.mrf.mxu1  ;;  %2799 = vmatprep.subr.bf16.mxu0 %v3129_v42  ;;  %v3526_v26 = vld [vmem:[#allocation6 + $0x3] ss:$0 sm:$0xff] }
 0x21c   : > { %v600_v52 = vadd.f32 %v2726_v47, %v3501_v58  ;;  %2751 = vmatprep.mubr.bf16.mxu0 %v623_v48  ;;  %v615_v56 = vmax.f32 %v589_v51, 0.0  ;;  %v3140_v48 = vld [vmem:[#allocation4 + $0x150] sm:$0xff]   ;;  %v3142_v47 = vld [vmem:[#allocation4 + $0x140] sm:$0xff]  }
 0x21d   : > { %v591_v53 = vpop.f32.mrf.mxu1  ;;  %2752 = vmatmul.mubr.bf16.gmra.mxu0 %v624_v49  ;;  %2833 = vmatprep.subr.bf16.mxu1 %v3140_v48  ;;  %v3141_v49 = vld [vmem:[#allocation4 + $0x148] sm:$0xff]   ;;  %v3144_v51 = vld [vmem:[#allocation4 + $0x1b0] sm:$0xff]  }
 0x21e   : > { %v592_v54 = vadd.f32 %v3501_v58, %v591_v53  ;;  %2800 = vmatpush3.bf16.msra.mxu0 %v3129_v42  ;;  %v618_v55 = vmax.f32 %v600_v52, 0.0  ;;  %v3134_v58 = vld [vmem:[#allocation4 + $0xc0] sm:$0xff]   ;;  %2834 = vmatpush3.bf16.msra.mxu1 %v3140_v48  ;;  %v3145_v52 = vld [vmem:[#allocation4 + $0x1a8] sm:$0xff]   ;;  %v3147_v53 = vld [vmem:[#allocation4 + $0x198] sm:$0xff]  }
 0x21f   : > { %2801 = vmatprep.subr.bf16.mxu0 %v3131_v50  ;;  %2788 = vmatmul.mubr.bf16.gmra.mxu1 %v3497_v36 }
 0x220   : > { %v616_v57 = vmax.f32 %v592_v54, 0.0  ;;  %v626_v61 = vpack.c.bf16 %v618_v55, %v617_v59  ;;  %2835 = vmatprep.subr.bf16.mxu1 %v3141_v49 }
 0x222   : > { %v625_v60 = vpack.c.bf16 %v616_v57, %v615_v56  ;;  %2802 = vmatpush3.bf16.msra.mxu0 %v3131_v50  ;;  %2836 = vmatpush3.bf16.msra.mxu1 %v3141_v49  ;;  %v3143_v50 = vld [vmem:[#allocation4 + $0x1b8] sm:$0xff]  }
 0x223   : > { %2803 = vmatprep.subr.bf16.mxu0 %v3133_v63  ;;  %2837 = vmatprep.subr.bf16.mxu1 %v3142_v47 }
 0x224   : > { %2755 = vmatprep.mubr.bf16.mxu0 %v625_v60 }
 0x225   : > { %2756 = vmatmul.mubr.bf16.gmra.mxu0 %v626_v61 }
 0x226   : > { %2804 = vmatpush3.bf16.msra.mxu0 %v3133_v63  ;;  %2838 = vmatpush3.bf16.msra.mxu1 %v3142_v47 }
 0x227   : > { %2805 = vmatprep.subr.bf16.mxu0 %v3134_v58 }
 0x22a   : > { %2806 = vmatpush3.bf16.msra.mxu0 %v3134_v58 }
 0x22b   : > { %2855 = vmatprep.subr.bf16.mxu0 %v3143_v50 }
 0x2c7   : > { %v2777_v54 = vpop.f32.mrf.mxu1 }
 0x2c9   : > { %v915_v55 = vpop.f32.mrf.mxu1 }
 0x2cb   : > { %v2778_v56 = vpop.f32.mrf.mxu1 }
 0x2cd   : > { %v2745_v27 = vpop.f32.mrf.mxu0  ;;  %v918_v57 = vpop.f32.mrf.mxu1 }
 0x2ce   : > { %v739_v7 = vadd.f32 %v2745_v27, %v2404_v2 }
 0x2cf   : > { %v730_v32 = vpop.f32.mrf.mxu0  ;;  %v2781_v59 = vpop.f32.mrf.mxu1 }
 0x2d0   : > { %v731_v4 = vadd.f32 %v2404_v2, %v730_v32 }
 0x2d1   : > { %v2746_v33 = vpop.f32.mrf.mxu0  ;;  %v931_v60 = vpop.f32.mrf.mxu1 }
 0x2d2   : > { %v742_v36 = vadd.f32 %v2746_v33, %v2404_v2 }
 0x2d3   : > { %v733_v3 = vpop.f32.mrf.mxu0  ;;  %v2782_v61 = vpop.f32.mrf.mxu1 }
 0x2d4   : > { %v734_v5 = vadd.f32 %v2404_v2, %v733_v3  ;;  %v794_v10 = vpack.c.bf16 %v742_v36, %v739_v7 }
 0x2d5   : > { %v2749_v8 = vpop.f32.mrf.mxu0  ;;  %v934_v62 = vpop.f32.mrf.mxu1 }
 0x2d6   : > { %v793_v9 = vpack.c.bf16 %v734_v5, %v731_v4  ;;  %v755_v17 = vadd.f32 %v2749_v8, %v2404_v2 }
 0x2d7   : > { %v746_v11 = vpop.f32.mrf.mxu0  ;;  %v2785_v0 = vpop.f32.mrf.mxu1 }
 0x2d8   : > { %2807 = vmatprep.mubr.bf16.mxu0 %v793_v9  ;;  %v747_v15 = vadd.f32 %v2404_v2, %v746_v11 }
 0x2d9   : > { %v2750_v12 = vpop.f32.mrf.mxu0  ;;  %2808 = vmatmul.mubr.bf16.vlgmr.msra.gmra.mxu0 %v794_v10  ;;  %v947_v33 = vpop.f32.mrf.mxu1 }
 0x2da   : > { %v758_v13 = vadd.f32 %v2750_v12, %v2404_v2  ;;  %2856 = vmatpush3.bf16.msra.mxu0 %v3143_v50 }
 0x2db   : > { %v749_v14 = vpop.f32.mrf.mxu0  ;;  %2857 = vmatprep.subr.bf16.mxu0 %v3144_v51  ;;  %v2786_v10 = vpop.f32.mrf.mxu1 }
 0x2dc   : > { %v750_v16 = vadd.f32 %v2404_v2, %v749_v14  ;;  %v796_v22 = vpack.c.bf16 %v758_v13, %v755_v17 }
 0x2dd   : > { %v2753_v18 = vpop.f32.mrf.mxu0 }
 0x2de   : > { %v795_v19 = vpack.c.bf16 %v750_v16, %v747_v15  ;;  %v771_v31 = vadd.f32 %v2753_v18, %v2404_v2  ;;  %2858 = vmatpush3.bf16.msra.mxu0 %v3144_v51 }
 0x2df   : > { %v762_v23 = vpop.f32.mrf.mxu0  ;;  %2859 = vmatprep.subr.bf16.mxu0 %v3145_v52 }
 0x2e0   : > { %2811 = vmatprep.mubr.bf16.mxu0 %v795_v19  ;;  %v763_v29 = vadd.f32 %v2404_v2, %v762_v23  ;;  %v950_v23 = vpop.f32.mrf.mxu1 }
 0x2e1   : > { %v2754_v24 = vpop.f32.mrf.mxu0  ;;  %2812 = vmatmul.mubr.bf16.gmra.mxu0 %v796_v22 }
 0x2e2   : > { %v774_v25 = vadd.f32 %v2754_v24, %v2404_v2  ;;  %2860 = vmatpush3.bf16.msra.mxu0 %v3145_v52 }
 0x2e3   : > { %v765_v28 = vpop.f32.mrf.mxu0  ;;  %2861 = vmatprep.subr.bf16.mxu0 %v3146_v6 }
 0x2e4   : > { %v766_v30 = vadd.f32 %v2404_v2, %v765_v28  ;;  %v798_v37 = vpack.c.bf16 %v774_v25, %v771_v31 }
 0x2e5   : > { %v2757_v34 = vpop.f32.mrf.mxu0 }
 0x2e6   : > { %v797_v35 = vpack.c.bf16 %v766_v30, %v763_v29  ;;  %v787_v44 = vadd.f32 %v2757_v34, %v2404_v2  ;;  %2862 = vmatpush3.bf16.msra.mxu0 %v3146_v6 }
 0x2e7   : > { %v778_v38 = vpop.f32.mrf.mxu0  ;;  %2863 = vmatprep.subr.bf16.mxu0 %v3147_v53 }
 0x2e8   : > { %2815 = vmatprep.mubr.bf16.mxu0 %v797_v35  ;;  %v779_v42 = vadd.f32 %v2404_v2, %v778_v38  ;;  %v2789_v35 = vpop.f32.mrf.mxu1 }
 0x2e9   : > { %v2758_v39 = vpop.f32.mrf.mxu0  ;;  %2816 = vmatmul.mubr.bf16.gmra.mxu0 %v798_v37 }
 0x2ea   : > { %v790_v40 = vadd.f32 %v2758_v39, %v2404_v2  ;;  %2864 = vmatpush3.bf16.msra.mxu0 %v3147_v53 }
 0x2eb   : > { %v781_v41 = vpop.f32.mrf.mxu0 }
 0x2ec   : > { %v782_v43 = vadd.f32 %v2404_v2, %v781_v41  ;;  %v800_v46 = vpack.c.bf16 %v790_v40, %v787_v44 }
 0x2ee   : > { %v799_v45 = vpack.c.bf16 %v782_v43, %v779_v42 }
 0x2f0   : > { %2819 = vmatprep.mubr.bf16.mxu0 %v799_v45 }
 0x2f1   : > { %2820 = vmatmul.mubr.bf16.gmra.mxu0 %v800_v46  ;;  %v963_v46 = vpop.f32.mrf.mxu1 }
 0x399   : > { %v2809_v63 = vpop.f32.mrf.mxu0 }
 0x39a   : > { %v1069_v20 = vadd.f32 %v2809_v63, %v2777_v54 }
 0x39b   : > { %v1060_v58 = vpop.f32.mrf.mxu0 }
 0x39c   : > { %v1061_v1 = vadd.f32 %v1060_v58, %v915_v55  ;;  %v1130_v4 = vadd.f32 %v3526_v26, %v1069_v20  ;;  %v2790_v55 = vpop.f32.mrf.mxu1 }
 0x39d   : > { %v2810_v21 = vpop.f32.mrf.mxu0 }
 0x39e   : > { %v1072_v27 = vadd.f32 %v2810_v21, %v2778_v56  ;;  %v1128_v2 = vadd.f32 %v3526_v26, %v1061_v1  ;;  %v1146_v14 = vmax.f32 %v1130_v4, 0.0  ;;  %v966_v1 = vpop.f32.mrf.mxu1 }
 0x39f   : > { %v1063_v32 = vpop.f32.mrf.mxu0 }
 0x3a0   : > { %v1131_v36 = vadd.f32 %v3526_v26, %v1072_v27  ;;  %v1064_v3 = vadd.f32 %v1063_v32, %v918_v57  ;;  %v1144_v11 = vmax.f32 %v1128_v2, 0.0 }
 0x3a1   : > { %v2813_v5 = vpop.f32.mrf.mxu0 }
 0x3a2   : > { %v1129_v7 = vadd.f32 %v3526_v26, %v1064_v3  ;;  %v1147_v8 = vmax.f32 %v1131_v36, 0.0  ;;  %v1085_v15 = vadd.f32 %v2813_v5, %v2781_v59 }
 0x3a3   : > { %v1076_v9 = vpop.f32.mrf.mxu0 }
 0x3a4   : > { %v1145_v12 = vmax.f32 %v1129_v7, 0.0  ;;  %v1077_v13 = vadd.f32 %v1076_v9, %v931_v60  ;;  %v1161_v19 = vpack.c.bf16 %v1147_v8, %v1146_v14  ;;  %v1134_v29 = vadd.f32 %v3526_v26, %v1085_v15  ;;  %v3152_v14 = vld [vmem:[#allocation4 + $0x1f0] sm:$0xff]   ;;  %v3154_v15 = vld [vmem:[#allocation4 + $0x1e0] sm:$0xff]  }
 0x3a5   : > { %v2814_v16 = vpop.f32.mrf.mxu0 }
 0x3a6   : > { %v1088_v17 = vadd.f32 %v2814_v16, %v2782_v61  ;;  %v1160_v18 = vpack.c.bf16 %v1145_v12, %v1144_v11  ;;  %v1132_v24 = vadd.f32 %v3526_v26, %v1077_v13  ;;  %v1150_v41 = vmax.f32 %v1134_v29, 0.0  ;;  %v3149_v11 = vld [vmem:[#allocation4 + $0x188] sm:$0xff]   ;;  %v3150_v12 = vld [vmem:[#allocation4 + $0x180] sm:$0xff]   ;;  %v3151_v13 = vld [vmem:[#allocation4 + $0x1f8] sm:$0xff]  }
 0x3a7   : > { %v1079_v22 = vpop.f32.mrf.mxu0  ;;  %2887 = vmatprep.subr.bf16.mxu1 %v3151_v13  ;;  %v3155_v16 = vld [vmem:[#allocation4 + $0x1d8] sm:$0xff]  }
 0x3a8   : > { %v1135_v25 = vadd.f32 %v3526_v26, %v1088_v17  ;;  %v1080_v28 = vadd.f32 %v1079_v22, %v934_v62  ;;  %2839 = vmatprep.mubr.bf16.mxu1 %v1160_v18  ;;  %v1148_v38 = vmax.f32 %v1132_v24, 0.0 }
 0x3a9   : > { %v2817_v30 = vpop.f32.mrf.mxu0  ;;  %2840 = vmatmul.mubr.bf16.vlgmr.msra.gmra.mxu1 %v1161_v19  ;;  %v2430_v19 = vld [vmem:[#allocation6 + $0x4] ss:$0 sm:$0xff] }
 0x3aa   : > { %v1133_v31 = vadd.f32 %v3526_v26, %v1080_v28  ;;  %v1151_v34 = vmax.f32 %v1135_v25, 0.0  ;;  %v1101_v42 = vadd.f32 %v2817_v30, %v2785_v0  ;;  %2888 = vmatpush3.bf16.msra.mxu1 %v3151_v13  ;;  %v3158_v13 = vld [vmem:[#allocation4 + $0x1c0] sm:$0xff]  }
 0x3ab   : > { %v1092_v37 = vpop.f32.mrf.mxu0  ;;  %2889 = vmatprep.subr.bf16.mxu1 %v3152_v14 }
 0x3ac   : > { %v1149_v39 = vmax.f32 %v1133_v31, 0.0  ;;  %v1093_v40 = vadd.f32 %v1092_v37, %v947_v33  ;;  %v1163_v49 = vpack.c.bf16 %v1151_v34, %v1150_v41  ;;  %v1138_v52 = vadd.f32 %v3526_v26, %v1101_v42 }
 0x3ad   : > { %v2818_v43 = vpop.f32.mrf.mxu0 }
 0x3ae   : > { %v1104_v44 = vadd.f32 %v2818_v43, %v2786_v10  ;;  %v1162_v45 = vpack.c.bf16 %v1149_v39, %v1148_v38  ;;  %v1136_v47 = vadd.f32 %v3526_v26, %v1093_v40  ;;  %v1154_v61 = vmax.f32 %v1138_v52, 0.0  ;;  %v3148_v10 = vld [vmem:[#allocation4 + $0x190] sm:$0xff]   ;;  %2890 = vmatpush3.bf16.msra.mxu1 %v3152_v14  ;;  %v3159_v14 = vld [vmem:[#allocation4 + $0x238] sm:$0xff]  }
 0x3af   : > { %v1095_v48 = vpop.f32.mrf.mxu0  ;;  %2865 = vmatprep.subr.bf16.mxu0 %v3148_v10 }
 0x3b0   : > { %v1139_v50 = vadd.f32 %v3526_v26, %v1104_v44  ;;  %v1096_v51 = vadd.f32 %v1095_v48, %v950_v23  ;;  %2843 = vmatprep.mubr.bf16.mxu1 %v1162_v45  ;;  %v1152_v57 = vmax.f32 %v1136_v47, 0.0  ;;  %2866 = vmatpush3.bf16.msra.mxu0 %v3148_v10 }
 0x3b1   : > { %v2821_v6 = vpop.f32.mrf.mxu0  ;;  %2844 = vmatmul.mubr.bf16.gmra.mxu1 %v1163_v49  ;;  %2867 = vmatprep.subr.bf16.mxu0 %v3149_v11 }
 0x3b2   : > { %v1137_v53 = vadd.f32 %v3526_v26, %v1096_v51  ;;  %v1155_v54 = vmax.f32 %v1139_v50, 0.0  ;;  %v1117_v62 = vadd.f32 %v2821_v6, %v2789_v35 }
 0x3b3   : > { %v1108_v56 = vpop.f32.mrf.mxu0 }
 0x3b4   : > { %v1153_v59 = vmax.f32 %v1137_v53, 0.0  ;;  %v1109_v60 = vadd.f32 %v1108_v56, %v963_v46  ;;  %v1165_v21 = vpack.c.bf16 %v1155_v54, %v1154_v61  ;;  %v1142_v2 = vadd.f32 %v3526_v26, %v1117_v62  ;;  %2868 = vmatpush3.bf16.msra.mxu0 %v3149_v11  ;;  %v3156_v11 = vld [vmem:[#allocation4 + $0x1d0] sm:$0xff]  }
 0x3b5   : > { %v2822_v63 = vpop.f32.mrf.mxu0  ;;  %2869 = vmatprep.subr.bf16.mxu0 %v3150_v12 }
 0x3b6   : > { %v1120_v58 = vadd.f32 %v2822_v63, %v2790_v55  ;;  %v1164_v0 = vpack.c.bf16 %v1153_v59, %v1152_v57  ;;  %v1140_v27 = vadd.f32 %v3526_v26, %v1109_v60  ;;  %v1158_v7 = vmax.f32 %v1142_v2, 0.0 }
 0x3b7   : > { %v1111_v20 = vpop.f32.mrf.mxu0 }
 0x3b8   : > { %v1143_v32 = vadd.f32 %v3526_v26, %v1120_v58  ;;  %v1112_v33 = vadd.f32 %v1111_v20, %v966_v1  ;;  %2847 = vmatprep.mubr.bf16.mxu1 %v1164_v0  ;;  %v1156_v4 = vmax.f32 %v1140_v27, 0.0  ;;  %2870 = vmatpush3.bf16.msra.mxu0 %v3150_v12  ;;  %v3157_v12 = vld [vmem:[#allocation4 + $0x1c8] sm:$0xff]  }
 0x3b9   : > { %2848 = vmatmul.mubr.bf16.gmra.mxu1 %v1165_v21  ;;  %2919 = vmatprep.subr.bf16.mxu0 %v3159_v14 }
 0x3ba   : > { %v1141_v36 = vadd.f32 %v3526_v26, %v1112_v33  ;;  %v1159_v3 = vmax.f32 %v1143_v32, 0.0  ;;  %v3153_v26 = vld [vmem:[#allocation4 + $0x1e8] sm:$0xff]  }
 0x3bb   : > { %2891 = vmatprep.subr.bf16.mxu1 %v3153_v26 }
 0x3bc   : > { %v1157_v5 = vmax.f32 %v1141_v36, 0.0  ;;  %v1167_v9 = vpack.c.bf16 %v1159_v3, %v1158_v7  ;;  %2892 = vmatpush3.bf16.msra.mxu1 %v3153_v26  ;;  %v3160_v26 = vld [vmem:[#allocation4 + $0x230] sm:$0xff]  }
 0x3bd   : > { %2893 = vmatprep.subr.bf16.mxu1 %v3154_v15 }
 0x3be   : > { %v1166_v8 = vpack.c.bf16 %v1157_v5, %v1156_v4 }
 0x3c0   : > { %2851 = vmatprep.mubr.bf16.mxu1 %v1166_v8  ;;  %2894 = vmatpush3.bf16.msra.mxu1 %v3154_v15  ;;  %v3161_v15 = vld [vmem:[#allocation4 + $0x228] sm:$0xff]  }
 0x3c1   : > { %2852 = vmatmul.mubr.bf16.gmra.mxu1 %v1167_v9  ;;  %2895 = vmatprep.subr.bf16.mxu1 %v3155_v16 }
 0x3c4   : > { %2896 = vmatpush3.bf16.msra.mxu1 %v3155_v16  ;;  %v3162_v16 = vld [vmem:[#allocation4 + $0x220] sm:$0xff]  }
 0x3c5   : > { %2897 = vmatprep.subr.bf16.mxu1 %v3156_v11 }
 0x3c8   : > { %2898 = vmatpush3.bf16.msra.mxu1 %v3156_v11 }
 0x3c9   : > { %2899 = vmatprep.subr.bf16.mxu1 %v3157_v12 }
 0x3cc   : > { %2900 = vmatpush3.bf16.msra.mxu1 %v3157_v12 }
 0x3cd   : > { %2901 = vmatprep.subr.bf16.mxu1 %v3158_v13 }
 0x3d0   : > { %2902 = vmatpush3.bf16.msra.mxu1 %v3158_v13  ;;  %v3165_v13 = vld [vmem:[#allocation4 + $0x208] sm:$0xff]  }
 0x469   : > { %v2841_v17 = vpop.f32.mrf.mxu1 }
 0x46a   : > { %v1280_v25 = vadd.f32 %v2841_v17, %v2430_v19  ;;  %v3163_v17 = vld [vmem:[#allocation4 + $0x218] sm:$0xff]  }
 0x46b   : > { %v1271_v18 = vpop.f32.mrf.mxu1 }
 0x46c   : > { %v1272_v23 = vadd.f32 %v2430_v19, %v1271_v18  ;;  %v1336_v37 = vmax.f32 %v1280_v25, 0.0  ;;  %v3164_v18 = vld [vmem:[#allocation4 + $0x210] sm:$0xff]  }
 0x46d   : > { %v2842_v22 = vpop.f32.mrf.mxu1 }
 0x46e   : > { %v1283_v24 = vadd.f32 %v2842_v22, %v2430_v19  ;;  %v1334_v34 = vmax.f32 %v1272_v23, 0.0  ;;  %v2439_v23 = vld [vmem:[#allocation6 + $0x5] ss:$0 sm:$0xff] }
 0x46f   : > { %v1274_v28 = vpop.f32.mrf.mxu1 }
 0x470   : > { %v1275_v29 = vadd.f32 %v2430_v19, %v1274_v28  ;;  %v1337_v30 = vmax.f32 %v1283_v24, 0.0 }
 0x471   : > { %v2845_v31 = vpop.f32.mrf.mxu1 }
 0x472   : > { %v1335_v35 = vmax.f32 %v1275_v29, 0.0  ;;  %v1351_v40 = vpack.c.bf16 %v1337_v30, %v1336_v37  ;;  %v1296_v44 = vadd.f32 %v2845_v31, %v2430_v19 }
 0x473   : > { %v1287_v38 = vpop.f32.mrf.mxu1 }
 0x474   : > { %v1350_v39 = vpack.c.bf16 %v1335_v35, %v1334_v34  ;;  %v1288_v42 = vadd.f32 %v2430_v19, %v1287_v38  ;;  %v1340_v51 = vmax.f32 %v1296_v44, 0.0 }
 0x475   : > { %v2846_v41 = vpop.f32.mrf.mxu1 }
 0x476   : > { %v1299_v43 = vadd.f32 %v2846_v41, %v2430_v19  ;;  %2871 = vmatprep.mubr.bf16.mxu0 %v1350_v39  ;;  %v1338_v47 = vmax.f32 %v1288_v42, 0.0 }
 0x477   : > { %v1290_v45 = vpop.f32.mrf.mxu1  ;;  %2872 = vmatmul.mubr.bf16.vlgmr.msra.gmra.mxu0 %v1351_v40 }
 0x478   : > { %v1291_v46 = vadd.f32 %v2430_v19, %v1290_v45  ;;  %v1341_v48 = vmax.f32 %v1299_v43, 0.0  ;;  %2920 = vmatpush3.bf16.msra.mxu0 %v3159_v14  ;;  %v3166_v14 = vld [vmem:[#allocation4 + $0x200] sm:$0xff]  }
 0x479   : > { %v2849_v49 = vpop.f32.mrf.mxu1  ;;  %2921 = vmatprep.subr.bf16.mxu0 %v3160_v26 }
 0x47a   : > { %v1339_v50 = vmax.f32 %v1291_v46, 0.0  ;;  %v1353_v53 = vpack.c.bf16 %v1341_v48, %v1340_v51  ;;  %v1312_v57 = vadd.f32 %v2849_v49, %v2430_v19 }
 0x47b   : > { %v1303_v52 = vpop.f32.mrf.mxu1 }
 0x47c   : > { %v1352_v6 = vpack.c.bf16 %v1339_v50, %v1338_v47  ;;  %v1304_v55 = vadd.f32 %v2430_v19, %v1303_v52  ;;  %v1344_v0 = vmax.f32 %v1312_v57, 0.0  ;;  %2922 = vmatpush3.bf16.msra.mxu0 %v3160_v26  ;;  %v3167_v26 = vld [vmem:[#allocation4 + $0x278] sm:$0xff]  }
 0x47d   : > { %v2850_v54 = vpop.f32.mrf.mxu1  ;;  %2923 = vmatprep.subr.bf16.mxu0 %v3161_v15  ;;  %2951 = vmatprep.subr.bf16.mxu1 %v3167_v26 }
 0x47e   : > { %v1315_v56 = vadd.f32 %v2850_v54, %v2430_v19  ;;  %2875 = vmatprep.mubr.bf16.mxu0 %v1352_v6  ;;  %v1342_v63 = vmax.f32 %v1304_v55, 0.0 }
 0x47f   : > { %v1306_v59 = vpop.f32.mrf.mxu1  ;;  %2876 = vmatmul.mubr.bf16.gmra.mxu0 %v1353_v53 }
 0x480   : > { %v1307_v60 = vadd.f32 %v2430_v19, %v1306_v59  ;;  %v1345_v61 = vmax.f32 %v1315_v56, 0.0  ;;  %2924 = vmatpush3.bf16.msra.mxu0 %v3161_v15  ;;  %v3168_v15 = vld [vmem:[#allocation4 + $0x270] sm:$0xff]  }
 0x481   : > { %v2853_v62 = vpop.f32.mrf.mxu1  ;;  %2925 = vmatprep.subr.bf16.mxu0 %v3162_v16 }
 0x482   : > { %v1343_v58 = vmax.f32 %v1307_v60, 0.0  ;;  %v1355_v21 = vpack.c.bf16 %v1345_v61, %v1344_v0  ;;  %v1328_v2 = vadd.f32 %v2853_v62, %v2430_v19 }
 0x483   : > { %v1319_v1 = vpop.f32.mrf.mxu1 }
 0x484   : > { %v1354_v20 = vpack.c.bf16 %v1343_v58, %v1342_v63  ;;  %v1320_v32 = vadd.f32 %v2430_v19, %v1319_v1  ;;  %v1348_v8 = vmax.f32 %v1328_v2, 0.0  ;;  %2926 = vmatpush3.bf16.msra.mxu0 %v3162_v16  ;;  %v3169_v16 = vld [vmem:[#allocation4 + $0x268] sm:$0xff]  }
 0x485   : > { %v2854_v27 = vpop.f32.mrf.mxu1  ;;  %2927 = vmatprep.subr.bf16.mxu0 %v3163_v17 }
 0x486   : > { %v1331_v33 = vadd.f32 %v2854_v27, %v2430_v19  ;;  %2879 = vmatprep.mubr.bf16.mxu0 %v1354_v20  ;;  %v1346_v5 = vmax.f32 %v1320_v32, 0.0 }
 0x487   : > { %v1322_v36 = vpop.f32.mrf.mxu1  ;;  %2880 = vmatmul.mubr.bf16.gmra.mxu0 %v1355_v21 }
 0x488   : > { %v1323_v3 = vadd.f32 %v2430_v19, %v1322_v36  ;;  %v1349_v4 = vmax.f32 %v1331_v33, 0.0  ;;  %2928 = vmatpush3.bf16.msra.mxu0 %v3163_v17  ;;  %v3170_v17 = vld [vmem:[#allocation4 + $0x260] sm:$0xff]  }
 0x489   : > { %2929 = vmatprep.subr.bf16.mxu0 %v3164_v18 }
 0x48a   : > { %v1347_v7 = vmax.f32 %v1323_v3, 0.0  ;;  %v1357_v10 = vpack.c.bf16 %v1349_v4, %v1348_v8 }
 0x48c   : > { %v1356_v9 = vpack.c.bf16 %v1347_v7, %v1346_v5  ;;  %2930 = vmatpush3.bf16.msra.mxu0 %v3164_v18  ;;  %v3171_v18 = vld [vmem:[#allocation4 + $0x258] sm:$0xff]  }
 0x48d   : > { %2931 = vmatprep.subr.bf16.mxu0 %v3165_v13 }
 0x48e   : > { %2883 = vmatprep.mubr.bf16.mxu0 %v1356_v9 }
 0x48f   : > { %2884 = vmatmul.mubr.bf16.gmra.mxu0 %v1357_v10 }
 0x490   : > { %2932 = vmatpush3.bf16.msra.mxu0 %v3165_v13 }
 0x491   : > { %2933 = vmatprep.subr.bf16.mxu0 %v3166_v14 }
 0x494   : > { %2934 = vmatpush3.bf16.msra.mxu0 %v3166_v14 }
 0x537   : > { %v2873_v19 = vpop.f32.mrf.mxu0 }
 0x538   : > { %v1470_v29 = vadd.f32 %v2873_v19, %v2439_v23 }
 0x539   : > { %v1461_v22 = vpop.f32.mrf.mxu0 }
 0x53a   : > { %v1462_v25 = vadd.f32 %v2439_v23, %v1461_v22  ;;  %v1526_v39 = vmax.f32 %v1470_v29, 0.0 }
 0x53b   : > { %v2874_v24 = vpop.f32.mrf.mxu0 }
 0x53c   : > { %v1473_v28 = vadd.f32 %v2874_v24, %v2439_v23  ;;  %v1524_v37 = vmax.f32 %v1462_v25, 0.0  ;;  %v2448_v24 = vld [vmem:[#allocation6 + $0x6] ss:$0 sm:$0xff] }
 0x53d   : > { %v1464_v30 = vpop.f32.mrf.mxu0 }
 0x53e   : > { %v1465_v31 = vadd.f32 %v2439_v23, %v1464_v30  ;;  %v1527_v34 = vmax.f32 %v1473_v28, 0.0 }
 0x53f   : > { %v2877_v35 = vpop.f32.mrf.mxu0 }
 0x540   : > { %v1525_v38 = vmax.f32 %v1465_v31, 0.0  ;;  %v1541_v42 = vpack.c.bf16 %v1527_v34, %v1526_v39  ;;  %v1486_v46 = vadd.f32 %v2877_v35, %v2439_v23 }
 0x541   : > { %v1477_v40 = vpop.f32.mrf.mxu0 }
 0x542   : > { %v1540_v41 = vpack.c.bf16 %v1525_v38, %v1524_v37  ;;  %v1478_v44 = vadd.f32 %v2439_v23, %v1477_v40  ;;  %v1530_v6 = vmax.f32 %v1486_v46, 0.0 }
 0x543   : > { %v2878_v43 = vpop.f32.mrf.mxu0 }
 0x544   : > { %v1489_v45 = vadd.f32 %v2878_v43, %v2439_v23  ;;  %2903 = vmatprep.mubr.bf16.mxu1 %v1540_v41  ;;  %v1528_v51 = vmax.f32 %v1478_v44, 0.0 }
 0x545   : > { %v1480_v48 = vpop.f32.mrf.mxu0  ;;  %2904 = vmatmul.mubr.bf16.vlgmr.msra.gmra.mxu1 %v1541_v42 }
 0x546   : > { %v1481_v49 = vadd.f32 %v2439_v23, %v1480_v48  ;;  %v1531_v47 = vmax.f32 %v1489_v45, 0.0  ;;  %2952 = vmatpush3.bf16.msra.mxu1 %v3167_v26 }
 0x547   : > { %v2881_v50 = vpop.f32.mrf.mxu0  ;;  %2953 = vmatprep.subr.bf16.mxu1 %v3168_v15 }
 0x548   : > { %v1529_v52 = vmax.f32 %v1481_v49, 0.0  ;;  %v1543_v55 = vpack.c.bf16 %v1531_v47, %v1530_v6  ;;  %v1502_v60 = vadd.f32 %v2881_v50, %v2439_v23 }
 0x549   : > { %v1493_v53 = vpop.f32.mrf.mxu0 }
 0x54a   : > { %v1542_v54 = vpack.c.bf16 %v1529_v52, %v1528_v51  ;;  %v1494_v57 = vadd.f32 %v2439_v23, %v1493_v53  ;;  %v1534_v20 = vmax.f32 %v1502_v60, 0.0  ;;  %2954 = vmatpush3.bf16.msra.mxu1 %v3168_v15 }
 0x54b   : > { %v2882_v56 = vpop.f32.mrf.mxu0  ;;  %2955 = vmatprep.subr.bf16.mxu1 %v3169_v16 }
 0x54c   : > { %v1505_v59 = vadd.f32 %v2882_v56, %v2439_v23  ;;  %2907 = vmatprep.mubr.bf16.mxu1 %v1542_v54  ;;  %v1532_v0 = vmax.f32 %v1494_v57, 0.0 }
 0x54d   : > { %v1496_v61 = vpop.f32.mrf.mxu0  ;;  %2908 = vmatmul.mubr.bf16.gmra.mxu1 %v1543_v55 }
 0x54e   : > { %v1497_v62 = vadd.f32 %v2439_v23, %v1496_v61  ;;  %v1535_v63 = vmax.f32 %v1505_v59, 0.0  ;;  %2956 = vmatpush3.bf16.msra.mxu1 %v3169_v16 }
 0x54f   : > { %v2885_v58 = vpop.f32.mrf.mxu0  ;;  %2957 = vmatprep.subr.bf16.mxu1 %v3170_v17 }
 0x550   : > { %v1533_v1 = vmax.f32 %v1497_v62, 0.0  ;;  %v1545_v32 = vpack.c.bf16 %v1535_v63, %v1534_v20  ;;  %v1518_v3 = vadd.f32 %v2885_v58, %v2439_v23  ;;  %v3172_v20 = vld [vmem:[#allocation4 + $0x250] sm:$0xff]  }
 0x551   : > { %v1509_v21 = vpop.f32.mrf.mxu0 }
 0x552   : > { %v1544_v27 = vpack.c.bf16 %v1533_v1, %v1532_v0  ;;  %v1510_v2 = vadd.f32 %v2439_v23, %v1509_v21  ;;  %v1538_v10 = vmax.f32 %v1518_v3, 0.0  ;;  %2958 = vmatpush3.bf16.msra.mxu1 %v3170_v17  ;;  %v3173_v21 = vld [vmem:[#allocation4 + $0x248] sm:$0xff]   ;;  %v3544_v3 = vld [vmem:[#allocation4 + $0x298] sm:$0xff]  }
 0x553   : > { %v2886_v33 = vpop.f32.mrf.mxu0  ;;  %2959 = vmatprep.subr.bf16.mxu1 %v3171_v18 }
 0x554   : > { %v1521_v36 = vadd.f32 %v2886_v33, %v2439_v23  ;;  %2911 = vmatprep.mubr.bf16.mxu1 %v1544_v27  ;;  %v1536_v8 = vmax.f32 %v1510_v2, 0.0  ;;  %v3174_v27 = vld [vmem:[#allocation4 + $0x240] sm:$0xff]   ;;  %v3176_v33 = vld [vmem:[#allocation4 + $0x2b0] sm:$0xff]   ;;  %v3177_v2 = vld [vmem:[#allocation4 + $0x2a8] sm:$0xff]  }
 0x555   : > { %v1512_v4 = vpop.f32.mrf.mxu0  ;;  %2912 = vmatmul.mubr.bf16.gmra.mxu1 %v1545_v32  ;;  %v3175_v32 = vld [vmem:[#allocation4 + $0x2b8] sm:$0xff]  }
 0x556   : > { %v1513_v5 = vadd.f32 %v2439_v23, %v1512_v4  ;;  %v1539_v7 = vmax.f32 %v1521_v36, 0.0  ;;  %2960 = vmatpush3.bf16.msra.mxu1 %v3171_v18  ;;  %2983 = vmatprep.subr.bf16.mxu0 %v3175_v32  ;;  %v3178_v36 = vld [vmem:[#allocation4 + $0x2a0] sm:$0xff]  }
 0x557   : > { %2961 = vmatprep.subr.bf16.mxu1 %v3172_v20 }
 0x558   : > { %v1537_v9 = vmax.f32 %v1513_v5, 0.0  ;;  %v1547_v12 = vpack.c.bf16 %v1539_v7, %v1538_v10  ;;  %v2457_v7 = vld [vmem:[#allocation6 + $0x7] ss:$0 sm:$0xff] }
 0x55a   : > { %v1546_v11 = vpack.c.bf16 %v1537_v9, %v1536_v8  ;;  %2962 = vmatpush3.bf16.msra.mxu1 %v3172_v20 }
 0x55b   : > { %2963 = vmatprep.subr.bf16.mxu1 %v3173_v21 }
 0x55c   : > { %2915 = vmatprep.mubr.bf16.mxu1 %v1546_v11 }
 0x55d   : > { %2916 = vmatmul.mubr.bf16.gmra.mxu1 %v1547_v12 }
 0x55e   : > { %2964 = vmatpush3.bf16.msra.mxu1 %v3173_v21  ;;  %v3180_v21 = vld [vmem:[#allocation4 + $0x290] sm:$0xff]  }
 0x55f   : > { %2965 = vmatprep.subr.bf16.mxu1 %v3174_v27 }
 0x562   : > { %2966 = vmatpush3.bf16.msra.mxu1 %v3174_v27  ;;  %v3181_v27 = vld [vmem:[#allocation4 + $0x288] sm:$0xff]  }
 0x563   : > { %3015 = vmatprep.subr.bf16.mxu1 %v3175_v32 }
 0x605   : > { %v2905_v19 = vpop.f32.mrf.mxu1 }
 0x606   : > { %v1660_v31 = vadd.f32 %v2905_v19, %v2448_v24 }
 0x607   : > { %v1651_v22 = vpop.f32.mrf.mxu1 }
 0x608   : > { %v1652_v29 = vadd.f32 %v2448_v24, %v1651_v22 }
 0x609   : > { %v2906_v23 = vpop.f32.mrf.mxu1 }
 0x60a   : > { %v1663_v25 = vadd.f32 %v2906_v23, %v2448_v24 }
 0x60b   : > { %v1654_v28 = vpop.f32.mrf.mxu1 }
 0x60c   : > { %v1655_v30 = vadd.f32 %v2448_v24, %v1654_v28  ;;  %v1715_v37 = vpack.c.bf16 %v1663_v25, %v1660_v31 }
 0x60d   : > { %v2909_v34 = vpop.f32.mrf.mxu1 }
 0x60e   : > { %v1714_v35 = vpack.c.bf16 %v1655_v30, %v1652_v29  ;;  %v1676_v44 = vadd.f32 %v2909_v34, %v2448_v24 }
 0x60f   : > { %v1667_v38 = vpop.f32.mrf.mxu1 }
 0x610   : > { %2935 = vmatprep.mubr.bf16.mxu0 %v1714_v35  ;;  %v1668_v42 = vadd.f32 %v2448_v24, %v1667_v38 }
 0x611   : > { %v2910_v39 = vpop.f32.mrf.mxu1  ;;  %2936 = vmatmul.mubr.bf16.vlgmr.msra.gmra.mxu0 %v1715_v37 }
 0x612   : > { %v1679_v40 = vadd.f32 %v2910_v39, %v2448_v24  ;;  %2984 = vmatpush3.bf16.msra.mxu0 %v3175_v32 }
 0x613   : > { %v1670_v41 = vpop.f32.mrf.mxu1  ;;  %2985 = vmatprep.subr.bf16.mxu0 %v3176_v33 }
 0x614   : > { %v1671_v43 = vadd.f32 %v2448_v24, %v1670_v41  ;;  %v1717_v48 = vpack.c.bf16 %v1679_v40, %v1676_v44 }
 0x615   : > { %v2913_v45 = vpop.f32.mrf.mxu1 }
 0x616   : > { %v1716_v46 = vpack.c.bf16 %v1671_v43, %v1668_v42  ;;  %v1692_v53 = vadd.f32 %v2913_v45, %v2448_v24  ;;  %2986 = vmatpush3.bf16.msra.mxu0 %v3176_v33 }
 0x617   : > { %v1683_v49 = vpop.f32.mrf.mxu1  ;;  %2987 = vmatprep.subr.bf16.mxu0 %v3177_v2 }
 0x618   : > { %2939 = vmatprep.mubr.bf16.mxu0 %v1716_v46  ;;  %v1684_v52 = vadd.f32 %v2448_v24, %v1683_v49 }
 0x619   : > { %v2914_v47 = vpop.f32.mrf.mxu1  ;;  %2940 = vmatmul.mubr.bf16.gmra.mxu0 %v1717_v48 }
 0x61a   : > { %v1695_v50 = vadd.f32 %v2914_v47, %v2448_v24  ;;  %2988 = vmatpush3.bf16.msra.mxu0 %v3177_v2 }
 0x61b   : > { %v1686_v51 = vpop.f32.mrf.mxu1  ;;  %2989 = vmatprep.subr.bf16.mxu0 %v3178_v36 }
 0x61c   : > { %v1687_v6 = vadd.f32 %v2448_v24, %v1686_v51  ;;  %v1719_v56 = vpack.c.bf16 %v1695_v50, %v1692_v53 }
 0x61d   : > { %v2917_v54 = vpop.f32.mrf.mxu1 }
 0x61e   : > { %v1718_v55 = vpack.c.bf16 %v1687_v6, %v1684_v52  ;;  %v1708_v58 = vadd.f32 %v2917_v54, %v2448_v24  ;;  %2990 = vmatpush3.bf16.msra.mxu0 %v3178_v36 }
 0x61f   : > { %v1699_v57 = vpop.f32.mrf.mxu1  ;;  %2991 = vmatprep.subr.bf16.mxu0 %v3544_v3 }
 0x620   : > { %2943 = vmatprep.mubr.bf16.mxu0 %v1718_v55  ;;  %v1700_v62 = vadd.f32 %v2448_v24, %v1699_v57 }
 0x621   : > { %v2918_v59 = vpop.f32.mrf.mxu1  ;;  %2944 = vmatmul.mubr.bf16.gmra.mxu0 %v1719_v56 }
 0x622   : > { %v1711_v60 = vadd.f32 %v2918_v59, %v2448_v24  ;;  %2992 = vmatpush3.bf16.msra.mxu0 %v3544_v3 }
 0x623   : > { %v1702_v61 = vpop.f32.mrf.mxu1  ;;  %2993 = vmatprep.subr.bf16.mxu0 %v3180_v21 }
 0x624   : > { %v1703_v63 = vadd.f32 %v2448_v24, %v1702_v61  ;;  %v1721_v1 = vpack.c.bf16 %v1711_v60, %v1708_v58 }
 0x626   : > { %v1720_v0 = vpack.c.bf16 %v1703_v63, %v1700_v62  ;;  %2994 = vmatpush3.bf16.msra.mxu0 %v3180_v21 }
 0x627   : > { %2995 = vmatprep.subr.bf16.mxu0 %v3181_v27 }
 0x628   : > { %2947 = vmatprep.mubr.bf16.mxu0 %v1720_v0 }
 0x629   : > { %2948 = vmatmul.mubr.bf16.gmra.mxu0 %v1721_v1 }
 0x62a   : > { %2996 = vmatpush3.bf16.msra.mxu0 %v3181_v27 }
 0x6d1   : > { %v2937_v4 = vpop.f32.mrf.mxu0 }
 0x6d2   : > { %v1834_v11 = vadd.f32 %v2937_v4, %v2457_v7 }
 0x6d3   : > { %v1825_v5 = vpop.f32.mrf.mxu0 }
 0x6d4   : > { %v1826_v9 = vadd.f32 %v2457_v7, %v1825_v5  ;;  %v1890_v17 = vmax.f32 %v1834_v11, 0.0 }
 0x6d5   : > { %v2938_v8 = vpop.f32.mrf.mxu0 }
 0x6d6   : > { %v1837_v10 = vadd.f32 %v2938_v8, %v2457_v7  ;;  %v1888_v15 = vmax.f32 %v1826_v9, 0.0 }
 0x6d7   : > { %v1828_v12 = vpop.f32.mrf.mxu0 }
 0x6d8   : > { %v1829_v13 = vadd.f32 %v2457_v7, %v1828_v12  ;;  %v1891_v14 = vmax.f32 %v1837_v10, 0.0 }
 0x6d9   : > { %v2941_v26 = vpop.f32.mrf.mxu0 }
 0x6da   : > { %v1889_v16 = vmax.f32 %v1829_v13, 0.0  ;;  %v1905_v22 = vpack.c.bf16 %v1891_v14, %v1890_v17  ;;  %v1850_v28 = vadd.f32 %v2941_v26, %v2457_v7 }
 0x6db   : > { %v1841_v18 = vpop.f32.mrf.mxu0 }
 0x6dc   : > { %v1904_v19 = vpack.c.bf16 %v1889_v16, %v1888_v15  ;;  %v1842_v24 = vadd.f32 %v2457_v7, %v1841_v18  ;;  %v1894_v38 = vmax.f32 %v1850_v28, 0.0 }
 0x6dd   : > { %v2942_v23 = vpop.f32.mrf.mxu0 }
 0x6de   : > { %v1853_v25 = vadd.f32 %v2942_v23, %v2457_v7  ;;  %2967 = vmatprep.mubr.bf16.mxu1 %v1904_v19  ;;  %v1892_v35 = vmax.f32 %v1842_v24, 0.0 }
 0x6df   : > { %v1844_v29 = vpop.f32.mrf.mxu0  ;;  %2968 = vmatmul.mubr.bf16.vlgmr.msra.gmra.mxu1 %v1905_v22 }
 0x6e0   : > { %v1845_v30 = vadd.f32 %v2457_v7, %v1844_v29  ;;  %3023 = vmatpush3.bf16.msra.mxu1 %v3175_v32  ;;  %v1895_v31 = vmax.f32 %v1853_v25, 0.0  ;;  %v3182_v32 = vld [vmem:[#allocation4 + $0x280] sm:$0xff]  }
 0x6e1   : > { %v2945_v34 = vpop.f32.mrf.mxu0  ;;  %3016 = vmatprep.subr.bf16.mxu1 %v3176_v33  ;;  %2997 = vmatprep.subr.bf16.mxu0 %v3182_v32 }
 0x6e2   : > { %v1893_v37 = vmax.f32 %v1845_v30, 0.0  ;;  %v1907_v41 = vpack.c.bf16 %v1895_v31, %v1894_v38  ;;  %v1866_v45 = vadd.f32 %v2945_v34, %v2457_v7  ;;  %2998 = vmatpush3.bf16.msra.mxu0 %v3182_v32 }
 0x6e3   : > { %v1857_v39 = vpop.f32.mrf.mxu0 }
 0x6e4   : > { %v1906_v40 = vpack.c.bf16 %v1893_v37, %v1892_v35  ;;  %3024 = vmatpush3.bf16.msra.mxu1 %v3176_v33  ;;  %v1858_v43 = vadd.f32 %v2457_v7, %v1857_v39  ;;  %v1898_v52 = vmax.f32 %v1866_v45, 0.0 }
 0x6e5   : > { %v2946_v42 = vpop.f32.mrf.mxu0  ;;  %3017 = vmatprep.subr.bf16.mxu1 %v3177_v2 }
 0x6e6   : > { %v1869_v44 = vadd.f32 %v2946_v42, %v2457_v7  ;;  %2971 = vmatprep.mubr.bf16.mxu1 %v1906_v40  ;;  %v1896_v50 = vmax.f32 %v1858_v43, 0.0 }
 0x6e7   : > { %v1860_v46 = vpop.f32.mrf.mxu0  ;;  %2972 = vmatmul.mubr.bf16.gmra.mxu1 %v1907_v41 }
 0x6e8   : > { %v1861_v48 = vadd.f32 %v2457_v7, %v1860_v46  ;;  %3025 = vmatpush3.bf16.msra.mxu1 %v3177_v2  ;;  %v1899_v49 = vmax.f32 %v1869_v44, 0.0 }
 0x6e9   : > { %v2949_v47 = vpop.f32.mrf.mxu0  ;;  %3018 = vmatprep.subr.bf16.mxu1 %v3178_v36 }
 0x6ea   : > { %v1897_v51 = vmax.f32 %v1861_v48, 0.0  ;;  %v1909_v54 = vpack.c.bf16 %v1899_v49, %v1898_v52  ;;  %v1882_v59 = vadd.f32 %v2949_v47, %v2457_v7 }
 0x6eb   : > { %v1873_v6 = vpop.f32.mrf.mxu0 }
 0x6ec   : > { %v1908_v53 = vpack.c.bf16 %v1897_v51, %v1896_v50  ;;  %3026 = vmatpush3.bf16.msra.mxu1 %v3178_v36  ;;  %v1874_v56 = vadd.f32 %v2457_v7, %v1873_v6  ;;  %v1902_v0 = vmax.f32 %v1882_v59, 0.0  ;;  %v2466_v36 = vld [vmem:[#allocation6 + $0x8] ss:$0 sm:$0xff] }
 0x6ed   : > { %v2950_v55 = vpop.f32.mrf.mxu0  ;;  %3019 = vmatprep.subr.bf16.mxu1 %v3544_v3 }
 0x6ee   : > { %v1885_v57 = vadd.f32 %v2950_v55, %v2457_v7  ;;  %2975 = vmatprep.mubr.bf16.mxu1 %v1908_v53  ;;  %v1900_v63 = vmax.f32 %v1874_v56, 0.0 }
 0x6ef   : > { %v1876_v60 = vpop.f32.mrf.mxu0  ;;  %2976 = vmatmul.mubr.bf16.gmra.mxu1 %v1909_v54 }
 0x6f0   : > { %v1877_v61 = vadd.f32 %v2457_v7, %v1876_v60  ;;  %3027 = vmatpush3.bf16.msra.mxu1 %v3544_v3  ;;  %v1903_v62 = vmax.f32 %v1885_v57, 0.0 }
 0x6f1   : > { %3020 = vmatprep.subr.bf16.mxu1 %v3180_v21 }
 0x6f2   : > { %v1901_v58 = vmax.f32 %v1877_v61, 0.0  ;;  %v1911_v20 = vpack.c.bf16 %v1903_v62, %v1902_v0 }
 0x6f4   : > { %v1910_v1 = vpack.c.bf16 %v1901_v58, %v1900_v63  ;;  %3028 = vmatpush3.bf16.msra.mxu1 %v3180_v21  ;;  %v2475_v58 = vld [vmem:[#allocation6 + $0x9] ss:$0 sm:$0xff] }
 0x6f5   : > { %3021 = vmatprep.subr.bf16.mxu1 %v3181_v27 }
 0x6f6   : > { %2979 = vmatprep.mubr.bf16.mxu1 %v1910_v1 }
 0x6f7   : > { %2980 = vmatmul.mubr.bf16.gmra.mxu1 %v1911_v20 }
 0x6f8   : > { %3029 = vmatpush3.bf16.msra.mxu1 %v3181_v27 }
 0x6f9   : > { %3022 = vmatprep.subr.bf16.mxu1 %v3182_v32 }
 0x6fc   : > { %3030 = vmatpush3.bf16.msra.mxu1 %v3182_v32 }
 0x79f   : > { %v2969_v33 = vpop.f32.mrf.mxu1 }
 0x7a0   : > { %v2024_v7 = vadd.f32 %v2969_v33, %v2466_v36 }
 0x7a1   : > { %v2015_v2 = vpop.f32.mrf.mxu1 }
 0x7a2   : > { %v2016_v4 = vadd.f32 %v2466_v36, %v2015_v2  ;;  %v2080_v14 = vmax.f32 %v2024_v7, 0.0 }
 0x7a3   : > { %v2970_v3 = vpop.f32.mrf.mxu1 }
 0x7a4   : > { %v2027_v5 = vadd.f32 %v2970_v3, %v2466_v36  ;;  %v2078_v12 = vmax.f32 %v2016_v4, 0.0 }
 0x7a5   : > { %v2018_v8 = vpop.f32.mrf.mxu1 }
 0x7a6   : > { %v2019_v9 = vadd.f32 %v2466_v36, %v2018_v8  ;;  %v2081_v10 = vmax.f32 %v2027_v5, 0.0 }
 0x7a7   : > { %v2973_v11 = vpop.f32.mrf.mxu1 }
 0x7a8   : > { %v2079_v13 = vmax.f32 %v2019_v9, 0.0  ;;  %v2095_v16 = vpack.c.bf16 %v2081_v10, %v2080_v14  ;;  %v2040_v22 = vadd.f32 %v2973_v11, %v2466_v36 }
 0x7a9   : > { %v2031_v26 = vpop.f32.mrf.mxu1 }
 0x7aa   : > { %v2094_v15 = vpack.c.bf16 %v2079_v13, %v2078_v12  ;;  %v2032_v18 = vadd.f32 %v2466_v36, %v2031_v26  ;;  %v2084_v31 = vmax.f32 %v2040_v22, 0.0 }
 0x7ab   : > { %v2974_v17 = vpop.f32.mrf.mxu1 }
 0x7ac   : > { %v2043_v19 = vadd.f32 %v2974_v17, %v2466_v36  ;;  %2999 = vmatprep.mubr.bf16.mxu0 %v2094_v15  ;;  %v2082_v29 = vmax.f32 %v2032_v18, 0.0 }
 0x7ad   : > { %v2034_v23 = vpop.f32.mrf.mxu1  ;;  %3000 = vmatmul.mubr.bf16.vlgmr.msra.gmra.mxu0 %v2095_v16 }
 0x7ae   : > { %v2035_v24 = vadd.f32 %v2466_v36, %v2034_v23  ;;  %v2085_v25 = vmax.f32 %v2043_v19, 0.0 }
 0x7af   : > { %v2977_v28 = vpop.f32.mrf.mxu1 }
 0x7b0   : > { %v2083_v30 = vmax.f32 %v2035_v24, 0.0  ;;  %v2097_v37 = vpack.c.bf16 %v2085_v25, %v2084_v31  ;;  %v2056_v41 = vadd.f32 %v2977_v28, %v2466_v36 }
 0x7b1   : > { %v2047_v34 = vpop.f32.mrf.mxu1 }
 0x7b2   : > { %v2096_v35 = vpack.c.bf16 %v2083_v30, %v2082_v29  ;;  %v2048_v39 = vadd.f32 %v2466_v36, %v2047_v34  ;;  %v2088_v49 = vmax.f32 %v2056_v41, 0.0 }
 0x7b3   : > { %v2978_v38 = vpop.f32.mrf.mxu1 }
 0x7b4   : > { %v2059_v40 = vadd.f32 %v2978_v38, %v2466_v36  ;;  %3003 = vmatprep.mubr.bf16.mxu0 %v2096_v35  ;;  %v2086_v46 = vmax.f32 %v2048_v39, 0.0 }
 0x7b5   : > { %v2050_v42 = vpop.f32.mrf.mxu1  ;;  %3004 = vmatmul.mubr.bf16.gmra.mxu0 %v2097_v37 }
 0x7b6   : > { %v2051_v43 = vadd.f32 %v2466_v36, %v2050_v42  ;;  %v2089_v44 = vmax.f32 %v2059_v40, 0.0 }
 0x7b7   : > { %v2981_v45 = vpop.f32.mrf.mxu1 }
 0x7b8   : > { %v2087_v48 = vmax.f32 %v2051_v43, 0.0  ;;  %v2099_v51 = vpack.c.bf16 %v2089_v44, %v2088_v49  ;;  %v2072_v54 = vadd.f32 %v2981_v45, %v2466_v36 }
 0x7b9   : > { %v2063_v47 = vpop.f32.mrf.mxu1 }
 0x7ba   : > { %v2098_v50 = vpack.c.bf16 %v2087_v48, %v2086_v46  ;;  %v2064_v6 = vadd.f32 %v2466_v36, %v2063_v47  ;;  %v2092_v61 = vmax.f32 %v2072_v54, 0.0 }
 0x7bb   : > { %v2982_v52 = vpop.f32.mrf.mxu1 }
 0x7bc   : > { %v2075_v53 = vadd.f32 %v2982_v52, %v2466_v36  ;;  %3007 = vmatprep.mubr.bf16.mxu1 %v2098_v50  ;;  %v2090_v59 = vmax.f32 %v2064_v6, 0.0 }
 0x7bd   : > { %v2066_v55 = vpop.f32.mrf.mxu1  ;;  %3008 = vmatmul.mubr.bf16.vlgmr.msra.gmra.mxu1 %v2099_v51 }
 0x7be   : > { %v2067_v56 = vadd.f32 %v2466_v36, %v2066_v55  ;;  %v2093_v57 = vmax.f32 %v2075_v53, 0.0 }
 0x7c0   : > { %v2091_v60 = vmax.f32 %v2067_v56, 0.0  ;;  %v2101_v63 = vpack.c.bf16 %v2093_v57, %v2092_v61 }
 0x7c2   : > { %v2100_v62 = vpack.c.bf16 %v2091_v60, %v2090_v59 }
 0x7c4   : > { %3011 = vmatprep.mubr.bf16.mxu1 %v2100_v62 }
 0x7c5   : > { %3012 = vmatmul.mubr.bf16.gmra.mxu1 %v2101_v63 }
 0x86d   : > { %v3001_v0 = vpop.f32.mrf.mxu0 }
 0x86e   : > { %v2214_v1 = vadd.f32 %v3001_v0, %v2475_v58 }
 0x86f   : > { %v2205_v20 = vpop.f32.mrf.mxu0 }
 0x870   : > { %2271 = vst.msk [vmem:[%s3555_s5 + $0x10] sm:$0xff] %vm2268_vm0, %v2214_v1  ;;  %v2206_v21 = vadd.f32 %v2475_v58, %v2205_v20 }
 0x871   : > { %v3002_v27 = vpop.f32.mrf.mxu0 }
 0x872   : > { %2269 = vst.msk [vmem:[%s3555_s5] sm:$0xff] %vm2268_vm0, %v2206_v21  ;;  %v2217_v32 = vadd.f32 %v3002_v27, %v2475_v58 }
 0x873   : > { %v2208_v33 = vpop.f32.mrf.mxu0 }
 0x874   : > { %2272 = vst.msk [vmem:[%s3555_s5 + $0x18] sm:$0xff] %vm2268_vm0, %v2217_v32  ;;  %v2209_v2 = vadd.f32 %v2475_v58, %v2208_v33 }
 0x875   : > { %v3005_v36 = vpop.f32.mrf.mxu0 }
 0x876   : > { %2270 = vst.msk [vmem:[%s3555_s5 + $0x8] sm:$0xff] %vm2268_vm0, %v2209_v2  ;;  %v2230_v3 = vadd.f32 %v3005_v36, %v2475_v58 }
 0x877   : > { %v2221_v4 = vpop.f32.mrf.mxu0 }
 0x878   : > { %2275 = vst.msk [vmem:[%s3555_s5 + $0x30] sm:$0xff] %vm2268_vm0, %v2230_v3  ;;  %v2222_v5 = vadd.f32 %v2475_v58, %v2221_v4 }
 0x879   : > { %v3006_v7 = vpop.f32.mrf.mxu0 }
 0x87a   : > { %2273 = vst.msk [vmem:[%s3555_s5 + $0x20] sm:$0xff] %vm2268_vm0, %v2222_v5  ;;  %v2233_v8 = vadd.f32 %v3006_v7, %v2475_v58 }
 0x87b   : > { %v2224_v9 = vpop.f32.mrf.mxu0 }
 0x87c   : > { %2276 = vst.msk [vmem:[%s3555_s5 + $0x38] sm:$0xff] %vm2268_vm0, %v2233_v8  ;;  %v2225_v10 = vadd.f32 %v2475_v58, %v2224_v9 }
 0x87d   : > { %v3009_v11 = vpop.f32.mrf.mxu1 }
 0x87e   : > { %2274 = vst.msk [vmem:[%s3555_s5 + $0x28] sm:$0xff] %vm2268_vm0, %v2225_v10  ;;  %v2246_v12 = vadd.f32 %v3009_v11, %v2475_v58 }
 0x87f   : > { %v2237_v13 = vpop.f32.mrf.mxu1 }
 0x880   : > { %2279 = vst.msk [vmem:[%s3555_s5 + $0x50] sm:$0xff] %vm2268_vm0, %v2246_v12  ;;  %v2238_v14 = vadd.f32 %v2475_v58, %v2237_v13 }
 0x881   : > { %v3010_v26 = vpop.f32.mrf.mxu1 }
 0x882   : > { %2277 = vst.msk [vmem:[%s3555_s5 + $0x40] sm:$0xff] %vm2268_vm0, %v2238_v14  ;;  %v2249_v15 = vadd.f32 %v3010_v26, %v2475_v58 }
 0x883   : > { %v2240_v16 = vpop.f32.mrf.mxu1 }
 0x884   : > { %2280 = vst.msk [vmem:[%s3555_s5 + $0x58] sm:$0xff] %vm2268_vm0, %v2249_v15  ;;  %v2241_v17 = vadd.f32 %v2475_v58, %v2240_v16 }
 0x885   : > { %v3013_v18 = vpop.f32.mrf.mxu1 }
 0x886   : > { %2278 = vst.msk [vmem:[%s3555_s5 + $0x48] sm:$0xff] %vm2268_vm0, %v2241_v17  ;;  %v2262_v19 = vadd.f32 %v3013_v18, %v2475_v58 }
 0x887   : > { %v2253_v22 = vpop.f32.mrf.mxu1 }
 0x888   : > { %2283 = vst.msk [vmem:[%s3555_s5 + $0x70] sm:$0xff] %vm2268_vm0, %v2262_v19  ;;  %v2254_v23 = vadd.f32 %v2475_v58, %v2253_v22 }
 0x889   : > { %v3014_v24 = vpop.f32.mrf.mxu1 }
 0x88a   : > { %2281 = vst.msk [vmem:[%s3555_s5 + $0x60] sm:$0xff] %vm2268_vm0, %v2254_v23  ;;  %v2265_v25 = vadd.f32 %v3014_v24, %v2475_v58 }
 0x88b   : > { %v2256_v28 = vpop.f32.mrf.mxu1 }
 0x88c   : > { %2284 = vst.msk [vmem:[%s3555_s5 + $0x78] sm:$0xff] %vm2268_vm0, %v2265_v25  ;;  %v2257_v29 = vadd.f32 %v2475_v58, %v2256_v28 }
 0x88e   : > { %2282 = vst.msk [vmem:[%s3555_s5 + $0x68] sm:$0xff] %vm2268_vm0, %v2257_v29 }
 0x88f PF: > { %p14_p10 = scmp.ge.s32.totalorder %s3398_s8, 4   ;;  %s3618_s12 = smov %s3293_s13 }
 0x890   : > { %s3619_s13 = smov %s3297_s14  ;;  %s3620_s14 = smov %s3407_s11 }
 0x891   : > { %s3621_s15 = smov %s3398_s8  ;;  %16 = sbr.rel (!%p14_p10) target bundleno = 4 (0x4), region = 80 }
 0x896   :  { %2307 = vsyncpa [#allocation3], 1 }
 0x897   :  { %2309 = vsyncpa [#allocation3 + $0x1], 1 }
 0x898   :  { %2310 = vsyncpa [#allocation5], 1 }

</bundles_post_ra>
